<compile_context>
chip_gen: v7x
topology: tpu7x:2x2x1
jax: 0.10.0
libtpu: 0.0.40
codegen_flags: <defaults>
</compile_context>

<pallas_src>
import functools

import jax
import jax.numpy as jnp
import numpy as np
from jax.experimental import pallas as pl
from jax.experimental.pallas import tpu as pltpu


# -----------------------------------------------------------------------------
# helpers
# -----------------------------------------------------------------------------
def _round_up(x, m):
    return (x + m - 1) // m * m


def _pick_tile(padded, cap, align):
    """Largest multiple of `align` <= cap that divides `padded`."""
    best = align
    t = align
    limit = min(cap, padded)
    while t <= limit:
        if padded % t == 0:
            best = t
        t += align
    return best


_VMEM_PHYS = None


def _vmem_physical_bytes():
    global _VMEM_PHYS
    if _VMEM_PHYS is None:
        try:
            _VMEM_PHYS = int(pltpu.get_tpu_info().vmem_capacity_bytes)
        except Exception:   # conservative default (v7x-sized)
            _VMEM_PHYS = 64 * 2**20
    return _VMEM_PHYS


def _compiler_params(dims, vmem_bytes):
    # generation-aware scoped VMEM: ~40 MiB on 64 MiB parts (v7x),
    # ~80 MiB on 128 MiB parts (v5e/v6e); ask for ~2x the tile footprint.
    cap = (_vmem_physical_bytes() * 5) // 8
    limit = int(min(max(2 * vmem_bytes, 16 * 2**20), cap))
    return pltpu.CompilerParams(dimension_semantics=dims, vmem_limit_bytes=limit)


# -----------------------------------------------------------------------------
# Conv matmul kernel (fused input-ReLU -> MXU bf16 matmul -> +bias -> ReLU)
# Single K step (K is small once cin is not padded), grid = (phase, M blocks).
# -----------------------------------------------------------------------------
def _mm_kernel(a_ref, b_ref, bias_ref, o_ref, *, relu_in, relu_out, n_real):
    a = a_ref[0]                                   # (tm, Kp) bf16
    if relu_in:
        a = jnp.maximum(a, 0)
    r = jnp.dot(a, b_ref[0], preferred_element_type=jnp.float32)   # (tm, Np) f32
    r = r + bias_ref[0]
    if relu_out:
        r = jnp.maximum(r, 0.0)
    o_ref[0] = r[:, :n_real].astype(o_ref.dtype)


def _batched_matmul(a, b, bias, *, n_real, relu_in=False, relu_out=False,
                    out_dtype=jnp.bfloat16):
    """a:(P,Mp,Kp) bf16, b:(P,Kp,Np) bf16, bias:(P,1,Np) f32 -> (P,Mp,n_real)."""
    P, Mp, Kp = a.shape
    Np = b.shape[2]
    # >=2 M steps when there is no phase axis, so v7x's 2nd TC gets work.
    m_cap = 512 if P > 1 else min(512, max(Mp // 2, 8))
    tm = _pick_tile(Mp, m_cap, 8)
    grid = (P, Mp // tm)
    out_elt = jnp.dtype(out_dtype).itemsize
    vmem = 2 * (tm * Kp * 2 + Kp * Np * 2 + Np * 4 + tm * n_real * out_elt)
    return pl.pallas_call(
        functools.partial(_mm_kernel, relu_in=relu_in, relu_out=relu_out,
                          n_real=n_real),
        out_shape=jax.ShapeDtypeStruct((P, Mp, n_real), out_dtype),
        grid=grid,
        in_specs=[pl.BlockSpec((1, tm, Kp), lambda p, i: (p, i, 0)),
                  pl.BlockSpec((1, Kp, Np), lambda p, i: (p, 0, 0)),
                  pl.BlockSpec((1, 1, Np), lambda p, i: (p, 0, 0))],
        out_specs=pl.BlockSpec((1, tm, n_real), lambda p, i: (p, i, 0)),
        compiler_params=_compiler_params(("parallel", "parallel"), vmem),
    )(a, b, bias)


# -----------------------------------------------------------------------------
# Fused residual block kernel: ReLU -> 3x3 -> ReLU -> 1x1 -> (+x)
# -----------------------------------------------------------------------------
def _res_kernel(a_ref, w3_ref, w1_ref, x_ref, o_ref, *, n_real):
    a = jnp.maximum(a_ref[...], 0)                                  # leading ReLU
    h = jnp.dot(a, w3_ref[...], preferred_element_type=jnp.float32)
    h = jnp.maximum(h, 0.0).astype(jnp.bfloat16)
    t = jnp.dot(h, w1_ref[...], preferred_element_type=jnp.float32)
    r = x_ref[...].astype(jnp.float32) + t[:, :n_real]              # residual add
    o_ref[...] = r.astype(o_ref.dtype)


def residual_block_p(x, w3, w1):
    """x:(B,H,W,C) bf16 (real channels); w3:(K3p,Rp) bf16; w1:(Rp,Np) bf16."""
    B, H, W, C = x.shape
    patches, _, _ = _im2col(x, 3, 3, 1, 1)
    M = B * H * W
    K3 = patches.shape[-1]
    K3p, Rp = w3.shape
    Np = w1.shape[1]
    Mp = _round_up(M, 8)
    tm = _pick_tile(Mp, min(512, max(Mp // 2, 8)), 8)
    a = jnp.pad(patches.reshape(M, K3).astype(jnp.bfloat16),
                ((0, Mp - M), (0, K3p - K3)))
    xr = jnp.pad(x.reshape(M, C), ((0, Mp - M), (0, 0)))
    vmem = (2 * (tm * K3p * 2 + tm * C * 2 + tm * C * 2)
            + K3p * Rp * 2 + Rp * Np * 2 + tm * Rp * 4 + tm * Np * 4)
    out = pl.pallas_call(
        functools.partial(_res_kernel, n_real=C),
        out_shape=jax.ShapeDtypeStruct((Mp, C), x.dtype),
        grid=(Mp // tm,),
        in_specs=[pl.BlockSpec((tm, K3p), lambda i: (i, 0)),
                  pl.BlockSpec((K3p, Rp), lambda i: (0, 0)),
                  pl.BlockSpec((Rp, Np), lambda i: (0, 0)),
                  pl.BlockSpec((tm, C), lambda i: (i, 0))],
        out_specs=pl.BlockSpec((tm, C), lambda i: (i, 0)),
        compiler_params=_compiler_params(("parallel",), vmem),
    )(a, w3, w1, xr)
    return out[:M].reshape(B, H, W, C)


# -----------------------------------------------------------------------------
# Vector quantization kernel (tiled over M, cross-block loss/perplexity)
# -----------------------------------------------------------------------------
def _vq_kernel(z_ref, e_ref, esq_ref, zq_ref, idx_ref, loss_ref, perp_ref,
               cnt_ref, ssq_ref, *, beta, n_e, m_total, d_real, tm):
    step = pl.program_id(0)

    @pl.when(step == 0)
    def _():
        cnt_ref[...] = jnp.zeros_like(cnt_ref)
        ssq_ref[...] = jnp.zeros_like(ssq_ref)

    z = z_ref[...]                                  # (tm, Dp) f32
    e = e_ref[...]                                  # (ne_p, Dp) f32 (zero-padded)

    # ||z - e||^2 up to a per-row constant: ||e||^2 - 2 z.e  (valid for argmin)
    ze = jax.lax.dot_general(z, e, (((1,), (1,)), ((), ())),
                             preferred_element_type=jnp.float32)   # (tm, ne_p)
    d = esq_ref[...] - 2.0 * ze                     # ||e||^2 precomputed outside

    ne_p = e.shape[0]
    col = jax.lax.broadcasted_iota(jnp.int32, (tm, ne_p), 1)
    d = jnp.where(col < n_e, d, 1e30)               # mask padded codebook rows
    min_d = jnp.min(d, axis=1, keepdims=True)
    # first index achieving the minimum (torch.argmin tie-breaking)
    idx = jnp.min(jnp.where(d <= min_d, col, ne_p), axis=1)        # (tm,)
    onehot = (col == idx[:, None]).astype(jnp.float32)             # (tm, ne_p)

    # rows beyond the real M are padding -> mask their contributions
    row = jax.lax.broadcasted_iota(jnp.int32, (tm, 1), 0) + step * tm
    valid = (row < m_total).astype(jnp.float32)

    zq = jnp.dot(onehot, e, preferred_element_type=jnp.float32)    # (tm, Dp)
    diff = (zq - z) * valid
    ssq_ref[...] += jnp.sum(diff * diff, axis=0, keepdims=True)
    cnt_ref[...] += jnp.sum(onehot * valid, axis=0, keepdims=True)

    zq_ref[...] = zq
    idx_ref[pl.ds(step, 1), :] = idx[None, :]       # lane-dense index row

    @pl.when(step == pl.num_programs(0) - 1)
    def _():
        # forward value only: mean((zq.detach()-z)^2)+beta*mean((zq-z.detach())^2)
        # == (1+beta)*mse ; straight-through gradients are NOT modeled here.
        loss_ref[0] = (1.0 + beta) * jnp.sum(ssq_ref[...]) / (m_total * d_real)
        e_mean = cnt_ref[...] / m_total
        perp_ref[0] = jnp.exp(-jnp.sum(e_mean * jnp.log(e_mean + 1e-10)))


def vector_quantize(z_flat, emb_p, *, beta, n_e, d_real):
    """z_flat: (M, Dp) f32 (D zero-padded); emb_p: (ne_p, Dp) f32 (zero-padded)."""
    M, Dp = z_flat.shape
    ne_p = emb_p.shape[0]
    Mp = _round_up(M, 8)
    tm = _pick_tile(Mp, 512, 8)
    nblk = Mp // tm
    z = jnp.pad(z_flat, ((0, Mp - M), (0, 0)))
    e_sq = jnp.sum(emb_p * emb_p, axis=1)[None, :]                 # (1, ne_p)
    vmem = 2 * (tm * Dp * 4 + tm * Dp * 4) + ne_p * Dp * 4 + (ne_p + Dp) * 8
    smem = pl.BlockSpec(memory_space=pltpu.MemorySpace.SMEM)
    zq, idx, loss, perp = pl.pallas_call(
        functools.partial(_vq_kernel, beta=beta, n_e=n_e,
                          m_total=M, d_real=d_real, tm=tm),
        out_shape=(jax.ShapeDtypeStruct((Mp, Dp), jnp.float32),    # z_q (padded rows)
                   jax.ShapeDtypeStruct((nblk, tm), jnp.int32),    # indices (rows)
                   jax.ShapeDtypeStruct((1,), jnp.float32),        # embedding loss
                   jax.ShapeDtypeStruct((1,), jnp.float32)),       # perplexity
        grid=(nblk,),
        in_specs=[pl.BlockSpec((tm, Dp), lambda i: (i, 0)),
                  pl.BlockSpec((ne_p, Dp), lambda i: (0, 0)),
                  pl.BlockSpec((1, ne_p), lambda i: (0, 0))],
        out_specs=(pl.BlockSpec((tm, Dp), lambda i: (i, 0)),
                   pl.BlockSpec((nblk, tm), lambda i: (0, 0)),     # resident, lane-dense
                   smem, smem),
        scratch_shapes=[pltpu.VMEM((1, ne_p), jnp.float32),        # per-code counts
                        pltpu.VMEM((1, Dp), jnp.float32)],         # sum sq diff
        # grid axis must be "arbitrary": loss/perplexity accumulate across blocks
        compiler_params=_compiler_params(("arbitrary",), vmem),
    )(z, emb_p, e_sq)
    idx = idx.reshape(Mp)[:M].reshape(M, 1)
    return zq[:M], idx, loss, perp


# -----------------------------------------------------------------------------
# Conv / ConvTranspose wrappers (im2col glue feeding the Pallas matmul)
# -----------------------------------------------------------------------------
def _im2col(x, kh, kw, stride, pad):
    """x:(B,H,W,C) -> (B,Ho,Wo,kh*kw*C), flat tap order = (i, j, c)."""
    B, H, W, C = x.shape
    xp = jnp.pad(x, ((0, 0), (pad, pad), (pad, pad), (0, 0)))
    Ho = (H + 2 * pad - kh) // stride + 1
    Wo = (W + 2 * pad - kw) // stride + 1
    cols = []
    for i in range(kh):
        for j in range(kw):
            cols.append(xp[:, i:i + (Ho - 1) * stride + 1:stride,
                              j:j + (Wo - 1) * stride + 1:stride, :])
    return jnp.concatenate(cols, axis=-1), Ho, Wo


def conv2d_p(x, w, b, *, kh, kw, stride, pad, n_real,
             relu_in=False, relu_out=False, out_dtype=jnp.bfloat16):
    """x:(B,H,W,C) real channels; w:(1,Kp,Np) bf16 (prepped); b:(1,1,Np) f32."""
    B = x.shape[0]
    patches, Ho, Wo = _im2col(x, kh, kw, stride, pad)
    K = patches.shape[-1]
    M = B * Ho * Wo
    Kp = w.shape[1]
    Mp = _round_up(M, 8)
    a = jnp.pad(patches.reshape(M, K).astype(jnp.bfloat16),
                ((0, Mp - M), (0, Kp - K)))
    y = _batched_matmul(a[None], w, b, n_real=n_real,
                        relu_in=relu_in, relu_out=relu_out, out_dtype=out_dtype)
    return y[0, :M].reshape(B, Ho, Wo, n_real)


def deconv4x4s2_p(x, w, b, *, n_real, relu_in=False, relu_out=False,
                  out_dtype=jnp.bfloat16):
    """ConvTranspose2d(k=4, s=2, p=1) via 4 sub-pixel phases (no zero dilation).

    x:(B,H,W,C) real channels; w:(4,Kp,Np) bf16 (per-phase 2x2 sub-kernels)."""
    B, H, W, C = x.shape
    Kp = w.shape[1]
    M = B * H * W
    Mp = _round_up(M, 8)
    phases = []
    for py in range(2):
        for px in range(2):
            xp = jnp.pad(x, ((0, 0), (1 - py, py), (1 - px, px), (0, 0)))
            taps = [xp[:, t:t + H, s:s + W, :] for t in range(2) for s in range(2)]
            phases.append(jnp.concatenate(taps, axis=-1).reshape(M, 4 * C))
    A = jnp.stack(phases, axis=0).astype(jnp.bfloat16)               # (4, M, 4C)
    A = jnp.pad(A, ((0, 0), (0, Mp - M), (0, Kp - 4 * C)))
    y = _batched_matmul(A, w, b, n_real=n_real, relu_in=relu_in,
                        relu_out=relu_out, out_dtype=out_dtype)      # (4, Mp, n)
    y = y[:, :M].reshape(2, 2, B, H, W, n_real)
    # y[py, px, b, u, v] -> out[b, 2u+py, 2v+px]
    y = jnp.transpose(y, (2, 3, 0, 4, 1, 5)).reshape(B, 2 * H, 2 * W, n_real)
    return y


# -----------------------------------------------------------------------------
# Parameter init (PyTorch-layout) + one-time prep into kernel layout
# -----------------------------------------------------------------------------
def _conv_init(key, cout, cin, kh, kw, bias=True):
    k1, k2 = jax.random.split(key)
    bound = 1.0 / np.sqrt(cin * kh * kw)
    w = jax.random.uniform(k1, (cout, cin, kh, kw), jnp.float32, -bound, bound)
    b = jax.random.uniform(k2, (cout,), jnp.float32, -bound, bound) if bias else None
    return w, b


def _convT_init(key, cin, cout, kh, kw):
    k1, k2 = jax.random.split(key)
    bound = 1.0 / np.sqrt(cin * kh * kw)
    w = jax.random.uniform(k1, (cin, cout, kh, kw), jnp.float32, -bound, bound)
    b = jax.random.uniform(k2, (cout,), jnp.float32, -bound, bound)
    return w, b


def init_params(key, h_dim, res_h_dim, n_embeddings, embedding_dim):
    ks = jax.random.split(key, 12)
    p = {}
    p["enc1_w"], p["enc1_b"] = _conv_init(ks[0], h_dim // 2, 1, 4, 4)
    p["enc2_w"], p["enc2_b"] = _conv_init(ks[1], h_dim, h_dim // 2, 4, 4)
    p["enc3_w"], p["enc3_b"] = _conv_init(ks[2], h_dim, h_dim, 3, 3)
    # residual stack (weights shared across layers, as in the reference impl)
    p["eres_w3"], _ = _conv_init(ks[3], res_h_dim, h_dim, 3, 3, bias=False)
    p["eres_w1"], _ = _conv_init(ks[4], h_dim, res_h_dim, 1, 1, bias=False)
    p["pq_w"], p["pq_b"] = _conv_init(ks[5], embedding_dim, h_dim, 1, 1)
    p["emb"] = jax.random.uniform(ks[6], (n_embeddings, embedding_dim),
                                  jnp.float32, -1.0 / n_embeddings, 1.0 / n_embeddings)
    p["dct1_w"], p["dct1_b"] = _convT_init(ks[7], embedding_dim, h_dim, 3, 3)
    p["dres_w3"], _ = _conv_init(ks[8], res_h_dim, h_dim, 3, 3, bias=False)
    p["dres_w1"], _ = _conv_init(ks[9], h_dim, res_h_dim, 1, 1, bias=False)
    p["dct2_w"], p["dct2_b"] = _convT_init(ks[10], h_dim, h_dim // 2, 4, 4)
    p["dct3_w"], p["dct3_b"] = _convT_init(ks[11], h_dim // 2, 1, 4, 4)
    return p


def prepare_params(raw):
    """One-time weight prep: flatten taps with REAL cin (K = kh*kw*cin), pad the
    flattened K and the output N to 128 once, flip deconv kernels, cast bf16."""

    def conv_w(w, b):
        cout, cin, kh, kw = w.shape
        K = kh * kw * cin
        Kp = _round_up(K, 128)
        Np = _round_up(cout, 128)
        w2d = jnp.transpose(w, (2, 3, 1, 0)).reshape(K, cout)        # (i,j,ci) x co
        w2d = jnp.pad(w2d, ((0, Kp - K), (0, Np - cout))).astype(jnp.bfloat16)
        bias = jnp.zeros((cout,), jnp.float32) if b is None else b
        bias = jnp.pad(bias, (0, Np - cout)).astype(jnp.float32).reshape(1, 1, Np)
        return w2d, bias

    def deconv_s1_w(wt, b):
        # ConvTranspose(stride=1) == direct conv with flipped kernel, channels swapped
        wc = jnp.transpose(wt[:, :, ::-1, ::-1], (1, 0, 2, 3))
        return conv_w(wc, b)

    def deconv_s2_w(wt, b):
        # ConvTranspose(k=4, s=2, p=1) -> 4 sub-pixel phases, each a 2x2 stride-1 conv
        cin, cout = wt.shape[0], wt.shape[1]
        wc = jnp.transpose(wt[:, :, ::-1, ::-1], (1, 0, 2, 3))       # (cout,cin,4,4)
        K = 4 * cin
        Kp = _round_up(K, 128)
        Np = _round_up(cout, 128)
        ws = []
        for py in range(2):
            for px in range(2):
                sub = wc[:, :, py::2, px::2]                          # taps i=2t+py, j=2s+px
                w2d = jnp.transpose(sub, (2, 3, 1, 0)).reshape(K, cout)
                ws.append(jnp.pad(w2d, ((0, Kp - K), (0, Np - cout))))
        w = jnp.stack(ws, 0).astype(jnp.bfloat16)
        bias = jnp.pad(b, (0, Np - cout)).astype(jnp.float32).reshape(1, 1, Np)
        return w, jnp.tile(bias, (4, 1, 1))

    n_e, e_dim = raw["emb"].shape
    nep, dp = _round_up(n_e, 128), _round_up(e_dim, 128)

    p = {}
    w, b = conv_w(raw["enc1_w"], raw["enc1_b"]);       p["enc1_w"], p["enc1_b"] = w[None], b
    w, b = conv_w(raw["enc2_w"], raw["enc2_b"]);       p["enc2_w"], p["enc2_b"] = w[None], b
    w, b = conv_w(raw["enc3_w"], raw["enc3_b"]);       p["enc3_w"], p["enc3_b"] = w[None], b
    p["eres_w3"] = conv_w(raw["eres_w3"], None)[0]
    p["eres_w1"] = conv_w(raw["eres_w1"], None)[0]
    w, b = conv_w(raw["pq_w"], raw["pq_b"]);           p["pq_w"], p["pq_b"] = w[None], b
    p["emb"] = jnp.pad(raw["emb"], ((0, nep - n_e), (0, dp - e_dim)))
    w, b = deconv_s1_w(raw["dct1_w"], raw["dct1_b"]);  p["dct1_w"], p["dct1_b"] = w[None], b
    p["dres_w3"] = conv_w(raw["dres_w3"], None)[0]
    p["dres_w1"] = conv_w(raw["dres_w1"], None)[0]
    p["dct2_w"], p["dct2_b"] = deconv_s2_w(raw["dct2_w"], raw["dct2_b"])
    p["dct3_w"], p["dct3_b"] = deconv_s2_w(raw["dct3_w"], raw["dct3_b"])
    return p


# -----------------------------------------------------------------------------
# VQVAE forward
# -----------------------------------------------------------------------------
def vqvae_forward(pp, x_nchw, *, h_dim, n_res_layers, beta,
                  n_embeddings, embedding_dim):
    x = jnp.transpose(x_nchw, (0, 2, 3, 1))                          # NHWC, C=1

    # --- Encoder (bf16 inter-layer activations, real channel counts) ---
    h = conv2d_p(x, pp["enc1_w"], pp["enc1_b"], kh=4, kw=4, stride=2, pad=1,
                 n_real=h_dim // 2, relu_out=True)
    h = conv2d_p(h, pp["enc2_w"], pp["enc2_b"], kh=4, kw=4, stride=2, pad=1,
                 n_real=h_dim, relu_out=True)
    h = conv2d_p(h, pp["enc3_w"], pp["enc3_b"], kh=3, kw=3, stride=1, pad=1,
                 n_real=h_dim)
    for _ in range(n_res_layers):
        h = residual_block_p(h, pp["eres_w3"], pp["eres_w1"])
    # the residual stack's trailing ReLU is fused into the next conv (relu_in=True)

    # --- pre-quantization 1x1 conv (keeps padded D so it feeds VQ directly) ---
    Dp = pp["pq_w"].shape[-1]
    z_e = conv2d_p(h, pp["pq_w"], pp["pq_b"], kh=1, kw=1, stride=1, pad=0,
                   n_real=Dp, relu_in=True, out_dtype=jnp.float32)
    B, H, W, _ = z_e.shape

    # --- Vector quantization ---
    zq_flat, idx, loss, perp = vector_quantize(
        z_e.reshape(B * H * W, Dp), pp["emb"],
        beta=beta, n_e=n_embeddings, d_real=embedding_dim)
    z_q = zq_flat[:, :embedding_dim].reshape(B, H, W, embedding_dim)

    # --- Decoder ---
    d = conv2d_p(z_q, pp["dct1_w"], pp["dct1_b"], kh=3, kw=3, stride=1, pad=1,
                 n_real=h_dim)
    for _ in range(n_res_layers):
        d = residual_block_p(d, pp["dres_w3"], pp["dres_w1"])
    d = deconv4x4s2_p(d, pp["dct2_w"], pp["dct2_b"], n_real=h_dim // 2,
                      relu_in=True, relu_out=True)
    d = deconv4x4s2_p(d, pp["dct3_w"], pp["dct3_b"], n_real=1,
                      out_dtype=jnp.float32)

    x_hat = jnp.transpose(d, (0, 3, 1, 2))                           # back to NCHW
    return loss[0], x_hat, perp[0], idx


# -----------------------------------------------------------------------------
if __name__ == "__main__":
    h_dim, res_h_dim, n_res_layers = 32, 16, 2
    n_embeddings, embedding_dim, beta = 64, 16, 0.25

    key = jax.random.PRNGKey(0)
    k_params, k_x = jax.random.split(key)
    raw = init_params(k_params, h_dim, res_h_dim, n_embeddings, embedding_dim)
    pp = prepare_params(raw)
    x = jax.random.normal(k_x, (2, 1, 16, 16), jnp.float32)

    fwd = jax.jit(functools.partial(vqvae_forward, h_dim=h_dim,
                                    n_res_layers=n_res_layers, beta=beta,
                                    n_embeddings=n_embeddings,
                                    embedding_dim=embedding_dim))
    embedding_loss, x_hat, perplexity, embedding_indices = fwd(pp, x)
    jax.block_until_ready((embedding_loss, x_hat, perplexity, embedding_indices))

    assert x_hat.shape == (2, 1, 16, 16)
    assert embedding_indices.shape == (2 * 4 * 4, 1)
    assert embedding_loss.shape == () and perplexity.shape == ()
    assert bool(jnp.isfinite(x_hat).all())
    assert bool(jnp.isfinite(embedding_loss)) and bool(jnp.isfinite(perplexity))

    print("KERNEL_OK")
</pallas_src>

<mosaic_0001>
module attributes {stable_mosaic.version = 11 : i64} {
  func.func @_mm_kernel(%arg0: i32, %arg1: i32, %arg2: memref<1x64x128xbf16, #tpu.memory_space<vmem>>, %arg3: memref<1x128x128xbf16, #tpu.memory_space<vmem>>, %arg4: memref<1x1x128xf32, #tpu.memory_space<vmem>>, %arg5: memref<1x64x16xbf16, #tpu.memory_space<vmem>>) attributes {dimension_semantics = [#tpu.dimension_semantics<parallel>, #tpu.dimension_semantics<parallel>], iteration_bounds = array<i64: 1, 2>, scalar_prefetch = 0 : i64, scratch_operands = 0 : i64, tpu.core_type = #tpu.core_type<tc>, window_params = [{transform_indices = @transform_0, window_bounds = array<i64: 1, 64, 128>}, {transform_indices = @transform_1, window_bounds = array<i64: 1, 128, 128>}, {transform_indices = @transform_2, window_bounds = array<i64: 1, 1, 128>}, {transform_indices = @transform_3, window_bounds = array<i64: 1, 64, 16>}]} {
    %c0 = arith.constant 0 : index
    %c0_0 = arith.constant 0 : index
    %c0_1 = arith.constant 0 : index
    %0 = vector.load %arg2[%c0, %c0_0, %c0_1] : memref<1x64x128xbf16, #tpu.memory_space<vmem>>, vector<1x64x128xbf16>
    %1 = vector.shape_cast %0 : vector<1x64x128xbf16> to vector<64x128xbf16>
    %c0_2 = arith.constant 0 : index
    %c0_3 = arith.constant 0 : index
    %c0_4 = arith.constant 0 : index
    %2 = vector.load %arg3[%c0_2, %c0_3, %c0_4] : memref<1x128x128xbf16, #tpu.memory_space<vmem>>, vector<1x128x128xbf16>
    %3 = vector.shape_cast %2 : vector<1x128x128xbf16> to vector<128x128xbf16>
    %cst = arith.constant dense<0.000000e+00> : vector<64x128xf32>
    %4 = tpu.matmul %1, %3, %cst {dimension_numbers = #tpu.dot_dimension_numbers<[1], [0], [0], [1], [0, 0, 1, 1], [], []>} : vector<64x128xbf16>, vector<128x128xbf16>, vector<64x128xf32> -> vector<64x128xf32>
    %c0_5 = arith.constant 0 : index
    %c0_6 = arith.constant 0 : index
    %c0_7 = arith.constant 0 : index
    %5 = vector.load %arg4[%c0_5, %c0_6, %c0_7] : memref<1x1x128xf32, #tpu.memory_space<vmem>>, vector<1x1x128xf32>
    %6 = vector.shape_cast %5 : vector<1x1x128xf32> to vector<1x128xf32>
    %7 = vector.broadcast %6 : vector<1x128xf32> to vector<64x128xf32>
    %8 = arith.addf %4, %7 : vector<64x128xf32>
    %cst_8 = arith.constant 0.000000e+00 : f32
    %9 = vector.broadcast %cst_8 : f32 to vector<64x128xf32>
    %10 = arith.maximumf %8, %9 : vector<64x128xf32>
    %11 = vector.extract_strided_slice %10 {offsets = [0, 0], sizes = [64, 16], strides = [1, 1]} : vector<64x128xf32> to vector<64x16xf32>
    %12 = arith.truncf %11 : vector<64x16xf32> to vector<64x16xbf16>
    %c0_9 = arith.constant 0 : index
    %c0_10 = arith.constant 0 : index
    %c0_11 = arith.constant 0 : index
    %13 = vector.load %arg5[%c0_9, %c0_10, %c0_11] : memref<1x64x16xbf16, #tpu.memory_space<vmem>>, vector<1x64x16xbf16>
    %14 = vector.shape_cast %13 : vector<1x64x16xbf16> to vector<64x16xbf16>
    %15 = vector.shape_cast %12 : vector<64x16xbf16> to vector<1x64x16xbf16>
    tpu.vector_store %arg5[%c0_9, %c0_10, %c0_11], %15 {strides = array<i32>} : memref<1x64x16xbf16, #tpu.memory_space<vmem>>, vector<1x64x16xbf16>,
    return
  }
  func.func @transform_0(%arg0: i32, %arg1: i32) -> (i32, i32, i32) {
    %c0_i32 = arith.constant 0 : i32
    %c0_i32_0 = arith.constant 0 : i32
    return %arg0, %arg1, %c0_i32 : i32, i32, i32
  }
  func.func @transform_1(%arg0: i32, %arg1: i32) -> (i32, i32, i32) {
    %c0_i32 = arith.constant 0 : i32
    %c0_i32_0 = arith.constant 0 : i32
    %c0_i32_1 = arith.constant 0 : i32
    return %arg0, %c0_i32, %c0_i32_0 : i32, i32, i32
  }
  func.func @transform_2(%arg0: i32, %arg1: i32) -> (i32, i32, i32) {
    %c0_i32 = arith.constant 0 : i32
    %c0_i32_0 = arith.constant 0 : i32
    %c0_i32_1 = arith.constant 0 : i32
    return %arg0, %c0_i32, %c0_i32_0 : i32, i32, i32
  }
  func.func @transform_3(%arg0: i32, %arg1: i32) -> (i32, i32, i32) {
    %c0_i32 = arith.constant 0 : i32
    %c0_i32_0 = arith.constant 0 : i32
    return %arg0, %arg1, %c0_i32 : i32, i32, i32
  }
}

module attributes {stable_mosaic.version = 11 : i64} {
  func.func @_mm_kernel(%arg0: i32, %arg1: i32, %arg2: memref<1x16x256xbf16, #tpu.memory_space<vmem>>, %arg3: memref<1x256x128xbf16, #tpu.memory_space<vmem>>, %arg4: memref<1x1x128xf32, #tpu.memory_space<vmem>>, %arg5: memref<1x16x32xbf16, #tpu.memory_space<vmem>>) attributes {dimension_semantics = [#tpu.dimension_semantics<parallel>, #tpu.dimension_semantics<parallel>], iteration_bounds = array<i64: 1, 2>, scalar_prefetch = 0 : i64, scratch_operands = 0 : i64, tpu.core_type = #tpu.core_type<tc>, window_params = [{transform_indices = @transform_0, window_bounds = array<i64: 1, 16, 256>}, {transform_indices = @transform_1, window_bounds = array<i64: 1, 256, 128>}, {transform_indices = @transform_2, window_bounds = array<i64: 1, 1, 128>}, {transform_indices = @transform_3, window_bounds = array<i64: 1, 16, 32>}]} {
    %c0 = arith.constant 0 : index
    %c0_0 = arith.constant 0 : index
    %c0_1 = arith.constant 0 : index
    %0 = vector.load %arg2[%c0, %c0_0, %c0_1] : memref<1x16x256xbf16, #tpu.memory_space<vmem>>, vector<1x16x256xbf16>
    %1 = vector.shape_cast %0 : vector<1x16x256xbf16> to vector<16x256xbf16>
    %c0_2 = arith.constant 0 : index
    %c0_3 = arith.constant 0 : index
    %c0_4 = arith.constant 0 : index
    %2 = vector.load %arg3[%c0_2, %c0_3, %c0_4] : memref<1x256x128xbf16, #tpu.memory_space<vmem>>, vector<1x256x128xbf16>
    %3 = vector.shape_cast %2 : vector<1x256x128xbf16> to vector<256x128xbf16>
    %cst = arith.constant dense<0.000000e+00> : vector<16x128xf32>
    %4 = tpu.matmul %1, %3, %cst {dimension_numbers = #tpu.dot_dimension_numbers<[1], [0], [0], [1], [0, 0, 1, 1], [], []>} : vector<16x256xbf16>, vector<256x128xbf16>, vector<16x128xf32> -> vector<16x128xf32>
    %c0_5 = arith.constant 0 : index
    %c0_6 = arith.constant 0 : index
    %c0_7 = arith.constant 0 : index
    %5 = vector.load %arg4[%c0_5, %c0_6, %c0_7] : memref<1x1x128xf32, #tpu.memory_space<vmem>>, vector<1x1x128xf32>
    %6 = vector.shape_cast %5 : vector<1x1x128xf32> to vector<1x128xf32>
    %7 = vector.broadcast %6 : vector<1x128xf32> to vector<16x128xf32>
    %8 = arith.addf %4, %7 : vector<16x128xf32>
    %cst_8 = arith.constant 0.000000e+00 : f32
    %9 = vector.broadcast %cst_8 : f32 to vector<16x128xf32>
    %10 = arith.maximumf %8, %9 : vector<16x128xf32>
    %11 = vector.extract_strided_slice %10 {offsets = [0, 0], sizes = [16, 32], strides = [1, 1]} : vector<16x128xf32> to vector<16x32xf32>
    %12 = arith.truncf %11 : vector<16x32xf32> to vector<16x32xbf16>
    %c0_9 = arith.constant 0 : index
    %c0_10 = arith.constant 0 : index
    %c0_11 = arith.constant 0 : index
    %13 = vector.load %arg5[%c0_9, %c0_10, %c0_11] : memref<1x16x32xbf16, #tpu.memory_space<vmem>>, vector<1x16x32xbf16>
    %14 = vector.shape_cast %13 : vector<1x16x32xbf16> to vector<16x32xbf16>
    %15 = vector.shape_cast %12 : vector<16x32xbf16> to vector<1x16x32xbf16>
    tpu.vector_store %arg5[%c0_9, %c0_10, %c0_11], %15 {strides = array<i32>} : memref<1x16x32xbf16, #tpu.memory_space<vmem>>, vector<1x16x32xbf16>,
    return
  }
  func.func @transform_0(%arg0: i32, %arg1: i32) -> (i32, i32, i32) {
    %c0_i32 = arith.constant 0 : i32
    %c0_i32_0 = arith.constant 0 : i32
    return %arg0, %arg1, %c0_i32 : i32, i32, i32
  }
  func.func @transform_1(%arg0: i32, %arg1: i32) -> (i32, i32, i32) {
    %c0_i32 = arith.constant 0 : i32
    %c0_i32_0 = arith.constant 0 : i32
    %c0_i32_1 = arith.constant 0 : i32
    return %arg0, %c0_i32, %c0_i32_0 : i32, i32, i32
  }
  func.func @transform_2(%arg0: i32, %arg1: i32) -> (i32, i32, i32) {
    %c0_i32 = arith.constant 0 : i32
    %c0_i32_0 = arith.constant 0 : i32
    %c0_i32_1 = arith.constant 0 : i32
    return %arg0, %c0_i32, %c0_i32_0 : i32, i32, i32
  }
  func.func @transform_3(%arg0: i32, %arg1: i32) -> (i32, i32, i32) {
    %c0_i32 = arith.constant 0 : i32
    %c0_i32_0 = arith.constant 0 : i32
    return %arg0, %arg1, %c0_i32 : i32, i32, i32
  }
}

module attributes {stable_mosaic.version = 11 : i64} {
  func.func @_mm_kernel(%arg0: i32, %arg1: i32, %arg2: memref<1x16x384xbf16, #tpu.memory_space<vmem>>, %arg3: memref<1x384x128xbf16, #tpu.memory_space<vmem>>, %arg4: memref<1x1x128xf32, #tpu.memory_space<vmem>>, %arg5: memref<1x16x32xbf16, #tpu.memory_space<vmem>>) attributes {dimension_semantics = [#tpu.dimension_semantics<parallel>, #tpu.dimension_semantics<parallel>], iteration_bounds = array<i64: 1, 2>, scalar_prefetch = 0 : i64, scratch_operands = 0 : i64, tpu.core_type = #tpu.core_type<tc>, window_params = [{transform_indices = @transform_0, window_bounds = array<i64: 1, 16, 384>}, {transform_indices = @transform_1, window_bounds = array<i64: 1, 384, 128>}, {transform_indices = @transform_2, window_bounds = array<i64: 1, 1, 128>}, {transform_indices = @transform_3, window_bounds = array<i64: 1, 16, 32>}]} {
    %c0 = arith.constant 0 : index
    %c0_0 = arith.constant 0 : index
    %c0_1 = arith.constant 0 : index
    %0 = vector.load %arg2[%c0, %c0_0, %c0_1] : memref<1x16x384xbf16, #tpu.memory_space<vmem>>, vector<1x16x384xbf16>
    %1 = vector.shape_cast %0 : vector<1x16x384xbf16> to vector<16x384xbf16>
    %c0_2 = arith.constant 0 : index
    %c0_3 = arith.constant 0 : index
    %c0_4 = arith.constant 0 : index
    %2 = vector.load %arg3[%c0_2, %c0_3, %c0_4] : memref<1x384x128xbf16, #tpu.memory_space<vmem>>, vector<1x384x128xbf16>
    %3 = vector.shape_cast %2 : vector<1x384x128xbf16> to vector<384x128xbf16>
    %cst = arith.constant dense<0.000000e+00> : vector<16x128xf32>
    %4 = tpu.matmul %1, %3, %cst {dimension_numbers = #tpu.dot_dimension_numbers<[1], [0], [0], [1], [0, 0, 1, 1], [], []>} : vector<16x384xbf16>, vector<384x128xbf16>, vector<16x128xf32> -> vector<16x128xf32>
    %c0_5 = arith.constant 0 : index
    %c0_6 = arith.constant 0 : index
    %c0_7 = arith.constant 0 : index
    %5 = vector.load %arg4[%c0_5, %c0_6, %c0_7] : memref<1x1x128xf32, #tpu.memory_space<vmem>>, vector<1x1x128xf32>
    %6 = vector.shape_cast %5 : vector<1x1x128xf32> to vector<1x128xf32>
    %7 = vector.broadcast %6 : vector<1x128xf32> to vector<16x128xf32>
    %8 = arith.addf %4, %7 : vector<16x128xf32>
    %9 = vector.extract_strided_slice %8 {offsets = [0, 0], sizes = [16, 32], strides = [1, 1]} : vector<16x128xf32> to vector<16x32xf32>
    %10 = arith.truncf %9 : vector<16x32xf32> to vector<16x32xbf16>
    %c0_8 = arith.constant 0 : index
    %c0_9 = arith.constant 0 : index
    %c0_10 = arith.constant 0 : index
    %11 = vector.load %arg5[%c0_8, %c0_9, %c0_10] : memref<1x16x32xbf16, #tpu.memory_space<vmem>>, vector<1x16x32xbf16>
    %12 = vector.shape_cast %11 : vector<1x16x32xbf16> to vector<16x32xbf16>
    %13 = vector.shape_cast %10 : vector<16x32xbf16> to vector<1x16x32xbf16>
    tpu.vector_store %arg5[%c0_8, %c0_9, %c0_10], %13 {strides = array<i32>} : memref<1x16x32xbf16, #tpu.memory_space<vmem>>, vector<1x16x32xbf16>,
    return
  }
  func.func @transform_0(%arg0: i32, %arg1: i32) -> (i32, i32, i32) {
    %c0_i32 = arith.constant 0 : i32
    %c0_i32_0 = arith.constant 0 : i32
    return %arg0, %arg1, %c0_i32 : i32, i32, i32
  }
  func.func @transform_1(%arg0: i32, %arg1: i32) -> (i32, i32, i32) {
    %c0_i32 = arith.constant 0 : i32
    %c0_i32_0 = arith.constant 0 : i32
    %c0_i32_1 = arith.constant 0 : i32
    return %arg0, %c0_i32, %c0_i32_0 : i32, i32, i32
  }
  func.func @transform_2(%arg0: i32, %arg1: i32) -> (i32, i32, i32) {
    %c0_i32 = arith.constant 0 : i32
    %c0_i32_0 = arith.constant 0 : i32
    %c0_i32_1 = arith.constant 0 : i32
    return %arg0, %c0_i32, %c0_i32_0 : i32, i32, i32
  }
  func.func @transform_3(%arg0: i32, %arg1: i32) -> (i32, i32, i32) {
    %c0_i32 = arith.constant 0 : i32
    %c0_i32_0 = arith.constant 0 : i32
    return %arg0, %arg1, %c0_i32 : i32, i32, i32
  }
}

module attributes {stable_mosaic.version = 11 : i64} {
  func.func @_res_kernel(%arg0: i32, %arg1: memref<16x384xbf16, #tpu.memory_space<vmem>>, %arg2: memref<384x128xbf16, #tpu.memory_space<vmem>>, %arg3: memref<128x128xbf16, #tpu.memory_space<vmem>>, %arg4: memref<16x32xbf16, #tpu.memory_space<vmem>>, %arg5: memref<16x32xbf16, #tpu.memory_space<vmem>>) attributes {dimension_semantics = [#tpu.dimension_semantics<parallel>], iteration_bounds = array<i64: 2>, scalar_prefetch = 0 : i64, scratch_operands = 0 : i64, tpu.core_type = #tpu.core_type<tc>, window_params = [{transform_indices = @transform_0, window_bounds = array<i64: 16, 384>}, {pipeline_mode = #tpu.pipeline_mode<synchronous>, transform_indices = @transform_1, window_bounds = array<i64: 384, 128>}, {pipeline_mode = #tpu.pipeline_mode<synchronous>, transform_indices = @transform_2, window_bounds = array<i64: 128, 128>}, {transform_indices = @transform_3, window_bounds = array<i64: 16, 32>}, {transform_indices = @transform_4, window_bounds = array<i64: 16, 32>}]} {
    %c0 = arith.constant 0 : index
    %c0_0 = arith.constant 0 : index
    %0 = vector.load %arg1[%c0, %c0_0] : memref<16x384xbf16, #tpu.memory_space<vmem>>, vector<16x384xbf16>
    %cst = arith.constant 0.000000e+00 : bf16
    %1 = vector.broadcast %cst : bf16 to vector<16x384xbf16>
    %2 = arith.maximumf %0, %1 : vector<16x384xbf16>
    %c0_1 = arith.constant 0 : index
    %c0_2 = arith.constant 0 : index
    %3 = vector.load %arg2[%c0_1, %c0_2] : memref<384x128xbf16, #tpu.memory_space<vmem>>, vector<384x128xbf16>
    %cst_3 = arith.constant dense<0.000000e+00> : vector<16x128xf32>
    %4 = tpu.matmul %2, %3, %cst_3 {dimension_numbers = #tpu.dot_dimension_numbers<[1], [0], [0], [1], [0, 0, 1, 1], [], []>} : vector<16x384xbf16>, vector<384x128xbf16>, vector<16x128xf32> -> vector<16x128xf32>
    %cst_4 = arith.constant 0.000000e+00 : f32
    %5 = vector.broadcast %cst_4 : f32 to vector<16x128xf32>
    %6 = arith.maximumf %4, %5 : vector<16x128xf32>
    %7 = arith.truncf %6 : vector<16x128xf32> to vector<16x128xbf16>
    %c0_5 = arith.constant 0 : index
    %c0_6 = arith.constant 0 : index
    %8 = vector.load %arg3[%c0_5, %c0_6] : memref<128x128xbf16, #tpu.memory_space<vmem>>, vector<128x128xbf16>
    %cst_7 = arith.constant dense<0.000000e+00> : vector<16x128xf32>
    %9 = tpu.matmul %7, %8, %cst_7 {dimension_numbers = #tpu.dot_dimension_numbers<[1], [0], [0], [1], [0, 0, 1, 1], [], []>} : vector<16x128xbf16>, vector<128x128xbf16>, vector<16x128xf32> -> vector<16x128xf32>
    %c0_8 = arith.constant 0 : index
    %c0_9 = arith.constant 0 : index
    %10 = vector.load %arg4[%c0_8, %c0_9] : memref<16x32xbf16, #tpu.memory_space<vmem>>, vector<16x32xbf16>
    %11 = arith.extf %10 : vector<16x32xbf16> to vector<16x32xf32>
    %12 = vector.extract_strided_slice %9 {offsets = [0, 0], sizes = [16, 32], strides = [1, 1]} : vector<16x128xf32> to vector<16x32xf32>
    %13 = arith.addf %11, %12 : vector<16x32xf32>
    %14 = arith.truncf %13 : vector<16x32xf32> to vector<16x32xbf16>
    %c0_10 = arith.constant 0 : index
    %c0_11 = arith.constant 0 : index
    %15 = vector.load %arg5[%c0_10, %c0_11] : memref<16x32xbf16, #tpu.memory_space<vmem>>, vector<16x32xbf16>
    tpu.vector_store %arg5[%c0_10, %c0_11], %14 {strides = array<i32>} : memref<16x32xbf16, #tpu.memory_space<vmem>>, vector<16x32xbf16>,
    return
  }
  func.func @transform_0(%arg0: i32) -> (i32, i32) {
    %c0_i32 = arith.constant 0 : i32
    %c0_i32_0 = arith.constant 0 : i32
    return %arg0, %c0_i32 : i32, i32
  }
  func.func @transform_1(%arg0: i32) -> (i32, i32) {
    %c0_i32 = arith.constant 0 : i32
    %c0_i32_0 = arith.constant 0 : i32
    %c0_i32_1 = arith.constant 0 : i32
    return %c0_i32, %c0_i32_0 : i32, i32
  }
  func.func @transform_2(%arg0: i32) -> (i32, i32) {
    %c0_i32 = arith.constant 0 : i32
    %c0_i32_0 = arith.constant 0 : i32
    %c0_i32_1 = arith.constant 0 : i32
    return %c0_i32, %c0_i32_0 : i32, i32
  }
  func.func @transform_3(%arg0: i32) -> (i32, i32) {
    %c0_i32 = arith.constant 0 : i32
    %c0_i32_0 = arith.constant 0 : i32
    return %arg0, %c0_i32 : i32, i32
  }
  func.func @transform_4(%arg0: i32) -> (i32, i32) {
    %c0_i32 = arith.constant 0 : i32
    %c0_i32_0 = arith.constant 0 : i32
    return %arg0, %c0_i32 : i32, i32
  }
}

module attributes {stable_mosaic.version = 11 : i64} {
  func.func @_mm_kernel(%arg0: i32, %arg1: i32, %arg2: memref<1x16x128xbf16, #tpu.memory_space<vmem>>, %arg3: memref<1x128x128xbf16, #tpu.memory_space<vmem>>, %arg4: memref<1x1x128xf32, #tpu.memory_space<vmem>>, %arg5: memref<1x16x128xf32, #tpu.memory_space<vmem>>) attributes {dimension_semantics = [#tpu.dimension_semantics<parallel>, #tpu.dimension_semantics<parallel>], iteration_bounds = array<i64: 1, 2>, scalar_prefetch = 0 : i64, scratch_operands = 0 : i64, tpu.core_type = #tpu.core_type<tc>, window_params = [{transform_indices = @transform_0, window_bounds = array<i64: 1, 16, 128>}, {transform_indices = @transform_1, window_bounds = array<i64: 1, 128, 128>}, {transform_indices = @transform_2, window_bounds = array<i64: 1, 1, 128>}, {transform_indices = @transform_3, window_bounds = array<i64: 1, 16, 128>}]} {
    %c0 = arith.constant 0 : index
    %c0_0 = arith.constant 0 : index
    %c0_1 = arith.constant 0 : index
    %0 = vector.load %arg2[%c0, %c0_0, %c0_1] : memref<1x16x128xbf16, #tpu.memory_space<vmem>>, vector<1x16x128xbf16>
    %1 = vector.shape_cast %0 : vector<1x16x128xbf16> to vector<16x128xbf16>
    %cst = arith.constant 0.000000e+00 : bf16
    %2 = vector.broadcast %cst : bf16 to vector<16x128xbf16>
    %3 = arith.maximumf %1, %2 : vector<16x128xbf16>
    %c0_2 = arith.constant 0 : index
    %c0_3 = arith.constant 0 : index
    %c0_4 = arith.constant 0 : index
    %4 = vector.load %arg3[%c0_2, %c0_3, %c0_4] : memref<1x128x128xbf16, #tpu.memory_space<vmem>>, vector<1x128x128xbf16>
    %5 = vector.shape_cast %4 : vector<1x128x128xbf16> to vector<128x128xbf16>
    %cst_5 = arith.constant dense<0.000000e+00> : vector<16x128xf32>
    %6 = tpu.matmul %3, %5, %cst_5 {dimension_numbers = #tpu.dot_dimension_numbers<[1], [0], [0], [1], [0, 0, 1, 1], [], []>} : vector<16x128xbf16>, vector<128x128xbf16>, vector<16x128xf32> -> vector<16x128xf32>
    %c0_6 = arith.constant 0 : index
    %c0_7 = arith.constant 0 : index
    %c0_8 = arith.constant 0 : index
    %7 = vector.load %arg4[%c0_6, %c0_7, %c0_8] : memref<1x1x128xf32, #tpu.memory_space<vmem>>, vector<1x1x128xf32>
    %8 = vector.shape_cast %7 : vector<1x1x128xf32> to vector<1x128xf32>
    %9 = vector.broadcast %8 : vector<1x128xf32> to vector<16x128xf32>
    %10 = arith.addf %6, %9 : vector<16x128xf32>
    %c0_9 = arith.constant 0 : index
    %c0_10 = arith.constant 0 : index
    %c0_11 = arith.constant 0 : index
    %11 = vector.load %arg5[%c0_9, %c0_10, %c0_11] : memref<1x16x128xf32, #tpu.memory_space<vmem>>, vector<1x16x128xf32>
    %12 = vector.shape_cast %11 : vector<1x16x128xf32> to vector<16x128xf32>
    %13 = vector.shape_cast %10 : vector<16x128xf32> to vector<1x16x128xf32>
    tpu.vector_store %arg5[%c0_9, %c0_10, %c0_11], %13 {strides = array<i32>} : memref<1x16x128xf32, #tpu.memory_space<vmem>>, vector<1x16x128xf32>,
    return
  }
  func.func @transform_0(%arg0: i32, %arg1: i32) -> (i32, i32, i32) {
    %c0_i32 = arith.constant 0 : i32
    %c0_i32_0 = arith.constant 0 : i32
    return %arg0, %arg1, %c0_i32 : i32, i32, i32
  }
  func.func @transform_1(%arg0: i32, %arg1: i32) -> (i32, i32, i32) {
    %c0_i32 = arith.constant 0 : i32
    %c0_i32_0 = arith.constant 0 : i32
    %c0_i32_1 = arith.constant 0 : i32
    return %arg0, %c0_i32, %c0_i32_0 : i32, i32, i32
  }
  func.func @transform_2(%arg0: i32, %arg1: i32) -> (i32, i32, i32) {
    %c0_i32 = arith.constant 0 : i32
    %c0_i32_0 = arith.constant 0 : i32
    %c0_i32_1 = arith.constant 0 : i32
    return %arg0, %c0_i32, %c0_i32_0 : i32, i32, i32
  }
  func.func @transform_3(%arg0: i32, %arg1: i32) -> (i32, i32, i32) {
    %c0_i32 = arith.constant 0 : i32
    %c0_i32_0 = arith.constant 0 : i32
    return %arg0, %arg1, %c0_i32 : i32, i32, i32
  }
}

module attributes {stable_mosaic.version = 11 : i64} {
  func.func @_vq_kernel(%arg0: i32, %arg1: memref<32x128xf32, #tpu.memory_space<vmem>>, %arg2: memref<128x128xf32, #tpu.memory_space<vmem>>, %arg3: memref<1x128xf32, #tpu.memory_space<vmem>>, %arg4: memref<32x128xf32, #tpu.memory_space<vmem>>, %arg5: memref<1x32xi32, #tpu.memory_space<vmem>>, %arg6: memref<1xf32, #tpu.memory_space<smem>>, %arg7: memref<1xf32, #tpu.memory_space<smem>>, %arg8: memref<1x128xf32, #tpu.memory_space<vmem>>, %arg9: memref<1x128xf32, #tpu.memory_space<vmem>>) attributes {dimension_semantics = [#tpu.dimension_semantics<arbitrary>], iteration_bounds = array<i64: 1>, scalar_prefetch = 0 : i64, scratch_operands = 2 : i64, tpu.core_type = #tpu.core_type<tc>, window_params = [{transform_indices = @transform_0, window_bounds = array<i64: 32, 128>}, {pipeline_mode = #tpu.pipeline_mode<synchronous>, transform_indices = @transform_1, window_bounds = array<i64: 128, 128>}, {pipeline_mode = #tpu.pipeline_mode<synchronous>, transform_indices = @transform_2, window_bounds = array<i64: 1, 128>}, {transform_indices = @transform_3, window_bounds = array<i64: 32, 128>}, {pipeline_mode = #tpu.pipeline_mode<synchronous>, transform_indices = @transform_4, window_bounds = array<i64: 1, 32>}, {transform_indices = @transform_5, window_bounds = array<i64: 1>}, {transform_indices = @transform_6, window_bounds = array<i64: 1>}]} {
    %c0_i32 = arith.constant 0 : i32
    %0 = arith.cmpi eq, %arg0, %c0_i32 : i32
    %1 = arith.extui %0 : i1 to i32
    %c0_i32_0 = arith.constant 0 : i32
    %2 = arith.cmpi ne, %1, %c0_i32_0 : i32
    scf.if %2 {
      %cst_27 = arith.constant 0.000000e+00 : f32
      %60 = vector.broadcast %cst_27 : f32 to vector<1x128xf32>
      %c0_28 = arith.constant 0 : index
      %c0_29 = arith.constant 0 : index
      %61 = vector.load %arg8[%c0_28, %c0_29] : memref<1x128xf32, #tpu.memory_space<vmem>>, vector<1x128xf32>
      tpu.vector_store %arg8[%c0_28, %c0_29], %60 {strides = array<i32>} : memref<1x128xf32, #tpu.memory_space<vmem>>, vector<1x128xf32>,
      %cst_30 = arith.constant 0.000000e+00 : f32
      %62 = vector.broadcast %cst_30 : f32 to vector<1x128xf32>
      %c0_31 = arith.constant 0 : index
      %c0_32 = arith.constant 0 : index
      %63 = vector.load %arg9[%c0_31, %c0_32] : memref<1x128xf32, #tpu.memory_space<vmem>>, vector<1x128xf32>
      tpu.vector_store %arg9[%c0_31, %c0_32], %62 {strides = array<i32>} : memref<1x128xf32, #tpu.memory_space<vmem>>, vector<1x128xf32>,
    } else {
    }
    %c0 = arith.constant 0 : index
    %c0_1 = arith.constant 0 : index
    %3 = vector.load %arg1[%c0, %c0_1] : memref<32x128xf32, #tpu.memory_space<vmem>>, vector<32x128xf32>
    %c0_2 = arith.constant 0 : index
    %c0_3 = arith.constant 0 : index
    %4 = vector.load %arg2[%c0_2, %c0_3] : memref<128x128xf32, #tpu.memory_space<vmem>>, vector<128x128xf32>
    %cst = arith.constant dense<0.000000e+00> : vector<32x128xf32>
    %5 = tpu.matmul %3, %4, %cst {dimension_numbers = #tpu.dot_dimension_numbers<[1], [1], [0], [0], [0, 0, 1, 0], [], []>} : vector<32x128xf32>, vector<128x128xf32>, vector<32x128xf32> -> vector<32x128xf32>
    %c0_4 = arith.constant 0 : index
    %c0_5 = arith.constant 0 : index
    %6 = vector.load %arg3[%c0_4, %c0_5] : memref<1x128xf32, #tpu.memory_space<vmem>>, vector<1x128xf32>
    %cst_6 = arith.constant 2.000000e+00 : f32
    %7 = vector.broadcast %cst_6 : f32 to vector<32x128xf32>
    %8 = arith.mulf %7, %5 : vector<32x128xf32>
    %9 = vector.broadcast %6 : vector<1x128xf32> to vector<32x128xf32>
    %10 = arith.subf %9, %8 : vector<32x128xf32>
    %11 = tpu.iota {dimensions = array<i32: 1>} : vector<32x128xi32>
    %c64_i32 = arith.constant 64 : i32
    %12 = vector.broadcast %c64_i32 : i32 to vector<32x128xi32>
    %13 = arith.cmpi slt, %11, %12 : vector<32x128xi32>
    %cst_7 = arith.constant 1.000000e+30 : f32
    %14 = vector.broadcast %cst_7 : f32 to vector<32x128xf32>
    %15 = arith.select %13, %10, %14 : vector<32x128xi1>, vector<32x128xf32>
    %cst_8 = arith.constant dense<0x7F800000> : vector<32xf32>
    %16 = vector.multi_reduction <minimumf>, %15, %cst_8 [1] : vector<32x128xf32> to vector<32xf32>
    %17 = vector.shape_cast %16 : vector<32xf32> to vector<32x1xf32>
    %18 = vector.broadcast %17 : vector<32x1xf32> to vector<32x128xf32>
    %19 = arith.cmpf ole, %15, %18 : vector<32x128xf32>
    %c128_i32 = arith.constant 128 : i32
    %20 = vector.broadcast %c128_i32 : i32 to vector<32x128xi32>
    %21 = arith.select %19, %11, %20 : vector<32x128xi1>, vector<32x128xi32>
    %cst_9 = arith.constant dense<2147483647> : vector<32xi32>
    %22 = vector.multi_reduction <minsi>, %21, %cst_9 [1] : vector<32x128xi32> to vector<32xi32>
    %23 = vector.shape_cast %22 : vector<32xi32> to vector<32x1xi32>
    %24 = vector.broadcast %23 : vector<32x1xi32> to vector<32x128xi32>
    %25 = arith.cmpi eq, %11, %24 : vector<32x128xi32>
    %26 = arith.extui %25 : vector<32x128xi1> to vector<32x128xi32>
    %27 = arith.sitofp %26 : vector<32x128xi32> to vector<32x128xf32>
    %28 = tpu.iota {dimensions = array<i32: 0>} : vector<32x1xi32>
    %c32_i32 = arith.constant 32 : i32
    %29 = arith.muli %arg0, %c32_i32 : i32
    %30 = vector.broadcast %29 : i32 to vector<32x1xi32>
    %31 = arith.addi %28, %30 : vector<32x1xi32>
    %c32_i32_10 = arith.constant 32 : i32
    %32 = vector.broadcast %c32_i32_10 : i32 to vector<32x1xi32>
    %33 = arith.cmpi slt, %31, %32 : vector<32x1xi32>
    %34 = arith.extui %33 : vector<32x1xi1> to vector<32x1xi32>
    %35 = arith.sitofp %34 : vector<32x1xi32> to vector<32x1xf32>
    %cst_11 = arith.constant dense<0.000000e+00> : vector<32x128xf32>
    %36 = tpu.matmul %27, %4, %cst_11 {dimension_numbers = #tpu.dot_dimension_numbers<[1], [0], [0], [1], [0, 0, 1, 1], [], []>} : vector<32x128xf32>, vector<128x128xf32>, vector<32x128xf32> -> vector<32x128xf32>
    %37 = arith.subf %36, %3 : vector<32x128xf32>
    %38 = vector.broadcast %35 : vector<32x1xf32> to vector<32x128xf32>
    %39 = arith.mulf %37, %38 : vector<32x128xf32>
    %c0_12 = arith.constant 0 : index
    %c0_13 = arith.constant 0 : index
    %40 = vector.load %arg9[%c0_12, %c0_13] : memref<1x128xf32, #tpu.memory_space<vmem>>, vector<1x128xf32>
    %41 = arith.mulf %39, %39 : vector<32x128xf32>
    %cst_14 = arith.constant dense<0.000000e+00> : vector<128xf32>
    %42 = vector.multi_reduction <add>, %41, %cst_14 [0] : vector<32x128xf32> to vector<128xf32>
    %43 = vector.shape_cast %42 : vector<128xf32> to vector<1x128xf32>
    %44 = arith.addf %40, %43 : vector<1x128xf32>
    %c0_15 = arith.constant 0 : index
    %c0_16 = arith.constant 0 : index
    %45 = vector.load %arg9[%c0_15, %c0_16] : memref<1x128xf32, #tpu.memory_space<vmem>>, vector<1x128xf32>
    tpu.vector_store %arg9[%c0_15, %c0_16], %44 {strides = array<i32>} : memref<1x128xf32, #tpu.memory_space<vmem>>, vector<1x128xf32>,
    %c0_17 = arith.constant 0 : index
    %c0_18 = arith.constant 0 : index
    %46 = vector.load %arg8[%c0_17, %c0_18] : memref<1x128xf32, #tpu.memory_space<vmem>>, vector<1x128xf32>
    %47 = vector.broadcast %35 : vector<32x1xf32> to vector<32x128xf32>
    %48 = arith.mulf %27, %47 : vector<32x128xf32>
    %cst_19 = arith.constant dense<0.000000e+00> : vector<128xf32>
    %49 = vector.multi_reduction <add>, %48, %cst_19 [0] : vector<32x128xf32> to vector<128xf32>
    %50 = vector.shape_cast %49 : vector<128xf32> to vector<1x128xf32>
    %51 = arith.addf %46, %50 : vector<1x128xf32>
    %c0_20 = arith.constant 0 : index
    %c0_21 = arith.constant 0 : index
    %52 = vector.load %arg8[%c0_20, %c0_21] : memref<1x128xf32, #tpu.memory_space<vmem>>, vector<1x128xf32>
    tpu.vector_store %arg8[%c0_20, %c0_21], %51 {strides = array<i32>} : memref<1x128xf32, #tpu.memory_space<vmem>>, vector<1x128xf32>,
    %c0_22 = arith.constant 0 : index
    %c0_23 = arith.constant 0 : index
    %53 = vector.load %arg4[%c0_22, %c0_23] : memref<32x128xf32, #tpu.memory_space<vmem>>, vector<32x128xf32>
    tpu.vector_store %arg4[%c0_22, %c0_23], %36 {strides = array<i32>} : memref<32x128xf32, #tpu.memory_space<vmem>>, vector<32x128xf32>,
    %54 = vector.shape_cast %22 : vector<32xi32> to vector<1x32xi32>
    %55 = arith.index_cast %arg0 : i32 to index
    %c0_24 = arith.constant 0 : index
    %56 = vector.load %arg5[%55, %c0_24] : memref<1x32xi32, #tpu.memory_space<vmem>>, vector<1x32xi32>
    tpu.vector_store %arg5[%55, %c0_24], %54 {strides = array<i32>} : memref<1x32xi32, #tpu.memory_space<vmem>>, vector<1x32xi32>,
    %c0_i32_25 = arith.constant 0 : i32
    %57 = arith.cmpi eq, %arg0, %c0_i32_25 : i32
    %58 = arith.extui %57 : i1 to i32
    %c0_i32_26 = arith.constant 0 : i32
    %59 = arith.cmpi ne, %58, %c0_i32_26 : i32
    scf.if %59 {
      %c0_27 = arith.constant 0 : index
      %c0_28 = arith.constant 0 : index
      %60 = vector.load %arg9[%c0_27, %c0_28] : memref<1x128xf32, #tpu.memory_space<vmem>>, vector<1x128xf32>
      %61 = vector.shape_cast %60 : vector<1x128xf32> to vector<1x1x128xf32>
      %cst_29 = arith.constant dense<0.000000e+00> : vector<1xf32>
      %62 = vector.multi_reduction <add>, %61, %cst_29 [1, 2] : vector<1x1x128xf32> to vector<1xf32>
      %63 = vector.shape_cast %62 : vector<1xf32> to vector<1x1x1xf32>
      %64 = vector.extract %63[0, 0, 0] : f32 from vector<1x1x1xf32>
      %cst_30 = arith.constant 1.250000e+00 : f32
      %65 = arith.mulf %cst_30, %64 : f32
      %cst_31 = arith.constant 5.120000e+02 : f32
      %66 = arith.divf %65, %cst_31 : f32
      %c0_32 = arith.constant 0 : index
      %67 = memref.load %arg6[%c0_32] : memref<1xf32, #tpu.memory_space<smem>>
      memref.store %66, %arg6[%c0_32] : memref<1xf32, #tpu.memory_space<smem>>
      %c0_33 = arith.constant 0 : index
      %c0_34 = arith.constant 0 : index
      %68 = vector.load %arg8[%c0_33, %c0_34] : memref<1x128xf32, #tpu.memory_space<vmem>>, vector<1x128xf32>
      %cst_35 = arith.constant 3.200000e+01 : f32
      %69 = vector.broadcast %cst_35 : f32 to vector<1x128xf32>
      %70 = arith.divf %68, %69 : vector<1x128xf32>
      %cst_36 = arith.constant 1.000000e-10 : f32
      %71 = vector.broadcast %cst_36 : f32 to vector<1x128xf32>
      %72 = arith.addf %70, %71 : vector<1x128xf32>
      %73 = math.log %72 : vector<1x128xf32>
      %74 = arith.mulf %70, %73 : vector<1x128xf32>
      %75 = vector.shape_cast %74 : vector<1x128xf32> to vector<1x1x128xf32>
      %cst_37 = arith.constant dense<0.000000e+00> : vector<1xf32>
      %76 = vector.multi_reduction <add>, %75, %cst_37 [1, 2] : vector<1x1x128xf32> to vector<1xf32>
      %77 = vector.shape_cast %76 : vector<1xf32> to vector<1x1x1xf32>
      %78 = vector.extract %77[0, 0, 0] : f32 from vector<1x1x1xf32>
      %cst_38 = arith.constant 0.000000e+00 : f32
      %79 = arith.subf %cst_38, %78 : f32
      %80 = math.exp %79 : f32
      %c0_39 = arith.constant 0 : index
      %81 = memref.load %arg7[%c0_39] : memref<1xf32, #tpu.memory_space<smem>>
      memref.store %80, %arg7[%c0_39] : memref<1xf32, #tpu.memory_space<smem>>
    } else {
    }
    return
  }
  func.func @transform_0(%arg0: i32) -> (i32, i32) {
    %c0_i32 = arith.constant 0 : i32
    %c0_i32_0 = arith.constant 0 : i32
    return %arg0, %c0_i32 : i32, i32
  }
  func.func @transform_1(%arg0: i32) -> (i32, i32) {
    %c0_i32 = arith.constant 0 : i32
    %c0_i32_0 = arith.constant 0 : i32
    %c0_i32_1 = arith.constant 0 : i32
    return %c0_i32, %c0_i32_0 : i32, i32
  }
  func.func @transform_2(%arg0: i32) -> (i32, i32) {
    %c0_i32 = arith.constant 0 : i32
    %c0_i32_0 = arith.constant 0 : i32
    %c0_i32_1 = arith.constant 0 : i32
    return %c0_i32, %c0_i32_0 : i32, i32
  }
  func.func @transform_3(%arg0: i32) -> (i32, i32) {
    %c0_i32 = arith.constant 0 : i32
    %c0_i32_0 = arith.constant 0 : i32
    return %arg0, %c0_i32 : i32, i32
  }
  func.func @transform_4(%arg0: i32) -> (i32, i32) {
    %c0_i32 = arith.constant 0 : i32
    %c0_i32_0 = arith.constant 0 : i32
    %c0_i32_1 = arith.constant 0 : i32
    return %c0_i32, %c0_i32_0 : i32, i32
  }
  func.func @transform_5(%arg0: i32) -> i32 {
    %c0_i32 = arith.constant 0 : i32
    %c0_i32_0 = arith.constant 0 : i32
    return %c0_i32 : i32
  }
  func.func @transform_6(%arg0: i32) -> i32 {
    %c0_i32 = arith.constant 0 : i32
    %c0_i32_0 = arith.constant 0 : i32
    return %c0_i32 : i32
  }
}

module attributes {stable_mosaic.version = 11 : i64} {
  func.func @_mm_kernel(%arg0: i32, %arg1: i32, %arg2: memref<1x16x256xbf16, #tpu.memory_space<vmem>>, %arg3: memref<1x256x128xbf16, #tpu.memory_space<vmem>>, %arg4: memref<1x1x128xf32, #tpu.memory_space<vmem>>, %arg5: memref<1x16x32xbf16, #tpu.memory_space<vmem>>) attributes {dimension_semantics = [#tpu.dimension_semantics<parallel>, #tpu.dimension_semantics<parallel>], iteration_bounds = array<i64: 1, 2>, scalar_prefetch = 0 : i64, scratch_operands = 0 : i64, tpu.core_type = #tpu.core_type<tc>, window_params = [{transform_indices = @transform_0, window_bounds = array<i64: 1, 16, 256>}, {transform_indices = @transform_1, window_bounds = array<i64: 1, 256, 128>}, {transform_indices = @transform_2, window_bounds = array<i64: 1, 1, 128>}, {transform_indices = @transform_3, window_bounds = array<i64: 1, 16, 32>}]} {
    %c0 = arith.constant 0 : index
    %c0_0 = arith.constant 0 : index
    %c0_1 = arith.constant 0 : index
    %0 = vector.load %arg2[%c0, %c0_0, %c0_1] : memref<1x16x256xbf16, #tpu.memory_space<vmem>>, vector<1x16x256xbf16>
    %1 = vector.shape_cast %0 : vector<1x16x256xbf16> to vector<16x256xbf16>
    %c0_2 = arith.constant 0 : index
    %c0_3 = arith.constant 0 : index
    %c0_4 = arith.constant 0 : index
    %2 = vector.load %arg3[%c0_2, %c0_3, %c0_4] : memref<1x256x128xbf16, #tpu.memory_space<vmem>>, vector<1x256x128xbf16>
    %3 = vector.shape_cast %2 : vector<1x256x128xbf16> to vector<256x128xbf16>
    %cst = arith.constant dense<0.000000e+00> : vector<16x128xf32>
    %4 = tpu.matmul %1, %3, %cst {dimension_numbers = #tpu.dot_dimension_numbers<[1], [0], [0], [1], [0, 0, 1, 1], [], []>} : vector<16x256xbf16>, vector<256x128xbf16>, vector<16x128xf32> -> vector<16x128xf32>
    %c0_5 = arith.constant 0 : index
    %c0_6 = arith.constant 0 : index
    %c0_7 = arith.constant 0 : index
    %5 = vector.load %arg4[%c0_5, %c0_6, %c0_7] : memref<1x1x128xf32, #tpu.memory_space<vmem>>, vector<1x1x128xf32>
    %6 = vector.shape_cast %5 : vector<1x1x128xf32> to vector<1x128xf32>
    %7 = vector.broadcast %6 : vector<1x128xf32> to vector<16x128xf32>
    %8 = arith.addf %4, %7 : vector<16x128xf32>
    %9 = vector.extract_strided_slice %8 {offsets = [0, 0], sizes = [16, 32], strides = [1, 1]} : vector<16x128xf32> to vector<16x32xf32>
    %10 = arith.truncf %9 : vector<16x32xf32> to vector<16x32xbf16>
    %c0_8 = arith.constant 0 : index
    %c0_9 = arith.constant 0 : index
    %c0_10 = arith.constant 0 : index
    %11 = vector.load %arg5[%c0_8, %c0_9, %c0_10] : memref<1x16x32xbf16, #tpu.memory_space<vmem>>, vector<1x16x32xbf16>
    %12 = vector.shape_cast %11 : vector<1x16x32xbf16> to vector<16x32xbf16>
    %13 = vector.shape_cast %10 : vector<16x32xbf16> to vector<1x16x32xbf16>
    tpu.vector_store %arg5[%c0_8, %c0_9, %c0_10], %13 {strides = array<i32>} : memref<1x16x32xbf16, #tpu.memory_space<vmem>>, vector<1x16x32xbf16>,
    return
  }
  func.func @transform_0(%arg0: i32, %arg1: i32) -> (i32, i32, i32) {
    %c0_i32 = arith.constant 0 : i32
    %c0_i32_0 = arith.constant 0 : i32
    return %arg0, %arg1, %c0_i32 : i32, i32, i32
  }
  func.func @transform_1(%arg0: i32, %arg1: i32) -> (i32, i32, i32) {
    %c0_i32 = arith.constant 0 : i32
    %c0_i32_0 = arith.constant 0 : i32
    %c0_i32_1 = arith.constant 0 : i32
    return %arg0, %c0_i32, %c0_i32_0 : i32, i32, i32
  }
  func.func @transform_2(%arg0: i32, %arg1: i32) -> (i32, i32, i32) {
    %c0_i32 = arith.constant 0 : i32
    %c0_i32_0 = arith.constant 0 : i32
    %c0_i32_1 = arith.constant 0 : i32
    return %arg0, %c0_i32, %c0_i32_0 : i32, i32, i32
  }
  func.func @transform_3(%arg0: i32, %arg1: i32) -> (i32, i32, i32) {
    %c0_i32 = arith.constant 0 : i32
    %c0_i32_0 = arith.constant 0 : i32
    return %arg0, %arg1, %c0_i32 : i32, i32, i32
  }
}

module attributes {stable_mosaic.version = 11 : i64} {
  func.func @_mm_kernel(%arg0: i32, %arg1: i32, %arg2: memref<1x32x128xbf16, #tpu.memory_space<vmem>>, %arg3: memref<1x128x128xbf16, #tpu.memory_space<vmem>>, %arg4: memref<1x1x128xf32, #tpu.memory_space<vmem>>, %arg5: memref<1x32x16xbf16, #tpu.memory_space<vmem>>) attributes {dimension_semantics = [#tpu.dimension_semantics<parallel>, #tpu.dimension_semantics<parallel>], iteration_bounds = array<i64: 4, 1>, scalar_prefetch = 0 : i64, scratch_operands = 0 : i64, tpu.core_type = #tpu.core_type<tc>, window_params = [{transform_indices = @transform_0, window_bounds = array<i64: 1, 32, 128>}, {transform_indices = @transform_1, window_bounds = array<i64: 1, 128, 128>}, {transform_indices = @transform_2, window_bounds = array<i64: 1, 1, 128>}, {transform_indices = @transform_3, window_bounds = array<i64: 1, 32, 16>}]} {
    %c0 = arith.constant 0 : index
    %c0_0 = arith.constant 0 : index
    %c0_1 = arith.constant 0 : index
    %0 = vector.load %arg2[%c0, %c0_0, %c0_1] : memref<1x32x128xbf16, #tpu.memory_space<vmem>>, vector<1x32x128xbf16>
    %1 = vector.shape_cast %0 : vector<1x32x128xbf16> to vector<32x128xbf16>
    %cst = arith.constant 0.000000e+00 : bf16
    %2 = vector.broadcast %cst : bf16 to vector<32x128xbf16>
    %3 = arith.maximumf %1, %2 : vector<32x128xbf16>
    %c0_2 = arith.constant 0 : index
    %c0_3 = arith.constant 0 : index
    %c0_4 = arith.constant 0 : index
    %4 = vector.load %arg3[%c0_2, %c0_3, %c0_4] : memref<1x128x128xbf16, #tpu.memory_space<vmem>>, vector<1x128x128xbf16>
    %5 = vector.shape_cast %4 : vector<1x128x128xbf16> to vector<128x128xbf16>
    %cst_5 = arith.constant dense<0.000000e+00> : vector<32x128xf32>
    %6 = tpu.matmul %3, %5, %cst_5 {dimension_numbers = #tpu.dot_dimension_numbers<[1], [0], [0], [1], [0, 0, 1, 1], [], []>} : vector<32x128xbf16>, vector<128x128xbf16>, vector<32x128xf32> -> vector<32x128xf32>
    %c0_6 = arith.constant 0 : index
    %c0_7 = arith.constant 0 : index
    %c0_8 = arith.constant 0 : index
    %7 = vector.load %arg4[%c0_6, %c0_7, %c0_8] : memref<1x1x128xf32, #tpu.memory_space<vmem>>, vector<1x1x128xf32>
    %8 = vector.shape_cast %7 : vector<1x1x128xf32> to vector<1x128xf32>
    %9 = vector.broadcast %8 : vector<1x128xf32> to vector<32x128xf32>
    %10 = arith.addf %6, %9 : vector<32x128xf32>
    %cst_9 = arith.constant 0.000000e+00 : f32
    %11 = vector.broadcast %cst_9 : f32 to vector<32x128xf32>
    %12 = arith.maximumf %10, %11 : vector<32x128xf32>
    %13 = vector.extract_strided_slice %12 {offsets = [0, 0], sizes = [32, 16], strides = [1, 1]} : vector<32x128xf32> to vector<32x16xf32>
    %14 = arith.truncf %13 : vector<32x16xf32> to vector<32x16xbf16>
    %c0_10 = arith.constant 0 : index
    %c0_11 = arith.constant 0 : index
    %c0_12 = arith.constant 0 : index
    %15 = vector.load %arg5[%c0_10, %c0_11, %c0_12] : memref<1x32x16xbf16, #tpu.memory_space<vmem>>, vector<1x32x16xbf16>
    %16 = vector.shape_cast %15 : vector<1x32x16xbf16> to vector<32x16xbf16>
    %17 = vector.shape_cast %14 : vector<32x16xbf16> to vector<1x32x16xbf16>
    tpu.vector_store %arg5[%c0_10, %c0_11, %c0_12], %17 {strides = array<i32>} : memref<1x32x16xbf16, #tpu.memory_space<vmem>>, vector<1x32x16xbf16>,
    return
  }
  func.func @transform_0(%arg0: i32, %arg1: i32) -> (i32, i32, i32) {
    %c0_i32 = arith.constant 0 : i32
    %c0_i32_0 = arith.constant 0 : i32
    return %arg0, %arg1, %c0_i32 : i32, i32, i32
  }
  func.func @transform_1(%arg0: i32, %arg1: i32) -> (i32, i32, i32) {
    %c0_i32 = arith.constant 0 : i32
    %c0_i32_0 = arith.constant 0 : i32
    %c0_i32_1 = arith.constant 0 : i32
    return %arg0, %c0_i32, %c0_i32_0 : i32, i32, i32
  }
  func.func @transform_2(%arg0: i32, %arg1: i32) -> (i32, i32, i32) {
    %c0_i32 = arith.constant 0 : i32
    %c0_i32_0 = arith.constant 0 : i32
    %c0_i32_1 = arith.constant 0 : i32
    return %arg0, %c0_i32, %c0_i32_0 : i32, i32, i32
  }
  func.func @transform_3(%arg0: i32, %arg1: i32) -> (i32, i32, i32) {
    %c0_i32 = arith.constant 0 : i32
    %c0_i32_0 = arith.constant 0 : i32
    return %arg0, %arg1, %c0_i32 : i32, i32, i32
  }
}

module attributes {stable_mosaic.version = 11 : i64} {
  func.func @_mm_kernel(%arg0: i32, %arg1: i32, %arg2: memref<1x128x128xbf16, #tpu.memory_space<vmem>>, %arg3: memref<1x128x128xbf16, #tpu.memory_space<vmem>>, %arg4: memref<1x1x128xf32, #tpu.memory_space<vmem>>, %arg5: memref<1x128x1xf32, #tpu.memory_space<vmem>>) attributes {dimension_semantics = [#tpu.dimension_semantics<parallel>, #tpu.dimension_semantics<parallel>], iteration_bounds = array<i64: 4, 1>, scalar_prefetch = 0 : i64, scratch_operands = 0 : i64, tpu.core_type = #tpu.core_type<tc>, window_params = [{transform_indices = @transform_0, window_bounds = array<i64: 1, 128, 128>}, {transform_indices = @transform_1, window_bounds = array<i64: 1, 128, 128>}, {transform_indices = @transform_2, window_bounds = array<i64: 1, 1, 128>}, {transform_indices = @transform_3, window_bounds = array<i64: 1, 128, 1>}]} {
    %c0 = arith.constant 0 : index
    %c0_0 = arith.constant 0 : index
    %c0_1 = arith.constant 0 : index
    %0 = vector.load %arg2[%c0, %c0_0, %c0_1] : memref<1x128x128xbf16, #tpu.memory_space<vmem>>, vector<1x128x128xbf16>
    %1 = vector.shape_cast %0 : vector<1x128x128xbf16> to vector<128x128xbf16>
    %c0_2 = arith.constant 0 : index
    %c0_3 = arith.constant 0 : index
    %c0_4 = arith.constant 0 : index
    %2 = vector.load %arg3[%c0_2, %c0_3, %c0_4] : memref<1x128x128xbf16, #tpu.memory_space<vmem>>, vector<1x128x128xbf16>
    %3 = vector.shape_cast %2 : vector<1x128x128xbf16> to vector<128x128xbf16>
    %cst = arith.constant dense<0.000000e+00> : vector<128x128xf32>
    %4 = tpu.matmul %1, %3, %cst {dimension_numbers = #tpu.dot_dimension_numbers<[1], [0], [0], [1], [0, 0, 1, 1], [], []>} : vector<128x128xbf16>, vector<128x128xbf16>, vector<128x128xf32> -> vector<128x128xf32>
    %c0_5 = arith.constant 0 : index
    %c0_6 = arith.constant 0 : index
    %c0_7 = arith.constant 0 : index
    %5 = vector.load %arg4[%c0_5, %c0_6, %c0_7] : memref<1x1x128xf32, #tpu.memory_space<vmem>>, vector<1x1x128xf32>
    %6 = vector.shape_cast %5 : vector<1x1x128xf32> to vector<1x128xf32>
    %7 = vector.broadcast %6 : vector<1x128xf32> to vector<128x128xf32>
    %8 = arith.addf %4, %7 : vector<128x128xf32>
    %9 = vector.extract_strided_slice %8 {offsets = [0, 0], sizes = [128, 1], strides = [1, 1]} : vector<128x128xf32> to vector<128x1xf32>
    %c0_8 = arith.constant 0 : index
    %c0_9 = arith.constant 0 : index
    %c0_10 = arith.constant 0 : index
    %10 = vector.load %arg5[%c0_8, %c0_9, %c0_10] : memref<1x128x1xf32, #tpu.memory_space<vmem>>, vector<1x128x1xf32>
    %11 = vector.shape_cast %10 : vector<1x128x1xf32> to vector<128x1xf32>
    %12 = vector.shape_cast %9 : vector<128x1xf32> to vector<1x128x1xf32>
    tpu.vector_store %arg5[%c0_8, %c0_9, %c0_10], %12 {strides = array<i32>} : memref<1x128x1xf32, #tpu.memory_space<vmem>>, vector<1x128x1xf32>,
    return
  }
  func.func @transform_0(%arg0: i32, %arg1: i32) -> (i32, i32, i32) {
    %c0_i32 = arith.constant 0 : i32
    %c0_i32_0 = arith.constant 0 : i32
    return %arg0, %arg1, %c0_i32 : i32, i32, i32
  }
  func.func @transform_1(%arg0: i32, %arg1: i32) -> (i32, i32, i32) {
    %c0_i32 = arith.constant 0 : i32
    %c0_i32_0 = arith.constant 0 : i32
    %c0_i32_1 = arith.constant 0 : i32
    return %arg0, %c0_i32, %c0_i32_0 : i32, i32, i32
  }
  func.func @transform_2(%arg0: i32, %arg1: i32) -> (i32, i32, i32) {
    %c0_i32 = arith.constant 0 : i32
    %c0_i32_0 = arith.constant 0 : i32
    %c0_i32_1 = arith.constant 0 : i32
    return %arg0, %c0_i32, %c0_i32_0 : i32, i32, i32
  }
  func.func @transform_3(%arg0: i32, %arg1: i32) -> (i32, i32, i32) {
    %c0_i32 = arith.constant 0 : i32
    %c0_i32_0 = arith.constant 0 : i32
    return %arg0, %arg1, %c0_i32 : i32, i32, i32
  }
}

</mosaic_0001>

<bundles_post_ra>
// kernel: vqvae_forward.12
= control target key start
LH: loop header
LB: loop body
LE: loop exit
PB: predicated region body
PF: predicated region fallthrough
CT: control target
= control target key end

     0   :  { %s750_s12 = smov 0   ;;  %s752_s13 = smov 0   ;;  %s831_s0 = inlined_call_operand.vmem [shape: bf16[1,128,128], index: 0, kind: input, shape index: {}]   ;;  %s832_s1 = inlined_call_operand.vmem [shape: bf16[1,128,128], index: 1, kind: input, shape index: {}]   ;;  %s833_s2 = inlined_call_operand.vmem [shape: f32[1,1,128], index: 2, kind: input, shape index: {}]   ;;  %s834_s3 = inlined_call_operand.vmem [shape: bf16[1,128,16], index: 3, kind: output, shape index: {}]  }
   0x1   :  { %s754_s14 = smov 0  }
   0x2 LB: > { %s22_s15 = sadd.s32 1, %s724_s13  ;;  %p582_p0 = scmp.ge.s32.totalorder %s728_s14, 1  ;;  %s728_s14 = sphi %s754_s14, %s13_s14   ;;  %s724_s13 = sphi %s752_s13, %s836_s13   ;;  %s720_s12 = sphi %s750_s12, %s835_s12  }
   0x3   : > { %p23_p1 = scmp.ge.s32.totalorder %s22_s15, 2  ;;  %p176_p2 = scmp.lt.s32.totalorder %s728_s14, 3 }
   0x5   : > { %s838_s15 = smov (%p23_p1, %s22_s15), 0  ;;  %p177_p3 = pnand %p582_p0, %p176_p2 }
   0x6   : > { %v694_v0 = vld [vmem:[%s832_s1] sm:$0xff] (!%p177_p3)   ;;  %s583_s18 = sshll.u32 (!%p177_p3), %s720_s12, 3  ;;  %v695_v1 = vld [vmem:[%s832_s1 + $0x8] sm:$0xff] (!%p177_p3)   ;;  %v696_v2 = vld [vmem:[%s832_s1 + $0x10] sm:$0xff] (!%p177_p3)   ;;  %vm453_vm0 = vcmask (!%p177_p3), 125952  }
   0x7   : > { %180 = sbr.rel (%p177_p3) target bundleno = 261 (0x105), region = 32  ;;  %p219_p4 = scmp.lt.s32.totalorder (!%p177_p3), %s583_s18, 15  ;;  %630 = vmatprep.subr.bf16.mxu0 (!%p177_p3), %v694_v0  ;;  %654 = vmatprep.subr.bf16.mxu1 (!%p177_p3), %v694_v0  ;;  %v697_v3 = vld [vmem:[%s832_s1 + $0x18] sm:$0xff] (!%p177_p3)   ;;  %v698_v6 = vld [vmem:[%s832_s1 + $0x20] sm:$0xff] (!%p177_p3)   ;;  %v699_v7 = vld [vmem:[%s832_s1 + $0x28] sm:$0xff] (!%p177_p3)  }
   0x8   : > { %631 = vmatpush3.bf16.msra.mxu0 (!%p177_p3), %v694_v0  ;;  %662 = vmatpush3.bf16.msra.mxu1 (!%p177_p3), %v694_v0  ;;  %v700_v8 = vld [vmem:[%s832_s1 + $0x30] sm:$0xff] (!%p177_p3)   ;;  %v701_v9 = vld [vmem:[%s832_s1 + $0x38] sm:$0xff] (!%p177_p3)   ;;  %v587_v12 = vld [vmem:[%s833_s2] ss:$0 sm:$0xff] (!%p177_p3) }
   0x9   : > { %632 = vmatprep.subr.bf16.mxu0 (!%p177_p3), %v695_v1  ;;  %655 = vmatprep.subr.bf16.mxu1 (!%p177_p3), %v695_v1 }
   0xc   : > { %633 = vmatpush3.bf16.msra.mxu0 (!%p177_p3), %v695_v1  ;;  %663 = vmatpush3.bf16.msra.mxu1 (!%p177_p3), %v695_v1 }
   0xd   : > { %634 = vmatprep.subr.bf16.mxu0 (!%p177_p3), %v696_v2  ;;  %656 = vmatprep.subr.bf16.mxu1 (!%p177_p3), %v696_v2 }
   0xe   : > { %s840_s18 = smov (!%p219_p4, %s583_s18), 15 }
   0xf   : > { %s584_s23 = sshll.u32 %s840_s18, 2 }
  0x10   : > { %s785_s26 = scalar_lea.vmem %s831_s0, %s584_s23  ;;  %635 = vmatpush3.bf16.msra.mxu0 %v696_v2  ;;  %664 = vmatpush3.bf16.msra.mxu1 %v696_v2  ;;  %s242_s17 = scalar_lea.vmem %s834_s3, %s584_s23 }
  0x11   : > { %v702_v4 = vld [vmem:[%s785_s26] sm:$0xff]   ;;  %v703_v5 = vld [vmem:[%s785_s26 + $0x10] sm:$0xff]   ;;  %636 = vmatprep.subr.bf16.mxu0 %v697_v3  ;;  %657 = vmatprep.subr.bf16.mxu1 %v697_v3  ;;  %v704_v10 = vld [vmem:[%s785_s26 + $0x8] sm:$0xff]  }
  0x12   : > { %646 = vmatprep.mubr.bf16.mxu0 %v702_v4  ;;  %650 = vmatprep.mubr.bf16.mxu1 %v703_v5  ;;  %v705_v11 = vld [vmem:[%s785_s26 + $0x18] sm:$0xff]  }
  0x14   : > { %637 = vmatpush3.bf16.msra.mxu0 %v697_v3  ;;  %665 = vmatpush3.bf16.msra.mxu1 %v697_v3 }
  0x15   : > { %638 = vmatprep.subr.bf16.mxu0 %v698_v6  ;;  %658 = vmatprep.subr.bf16.mxu1 %v698_v6 }
  0x18   : > { %639 = vmatpush3.bf16.msra.mxu0 %v698_v6  ;;  %666 = vmatpush3.bf16.msra.mxu1 %v698_v6 }
  0x19   : > { %640 = vmatprep.subr.bf16.mxu0 %v699_v7  ;;  %659 = vmatprep.subr.bf16.mxu1 %v699_v7 }
  0x1c   : > { %641 = vmatpush3.bf16.msra.mxu0 %v699_v7  ;;  %667 = vmatpush3.bf16.msra.mxu1 %v699_v7 }
  0x1d   : > { %642 = vmatprep.subr.bf16.mxu0 %v700_v8  ;;  %660 = vmatprep.subr.bf16.mxu1 %v700_v8 }
  0x20   : > { %643 = vmatpush3.bf16.msra.mxu0 %v700_v8  ;;  %668 = vmatpush3.bf16.msra.mxu1 %v700_v8 }
  0x21   : > { %644 = vmatprep.subr.bf16.mxu0 %v701_v9  ;;  %661 = vmatprep.subr.bf16.mxu1 %v701_v9 }
  0x24   : > { %645 = vmatpush3.bf16.msra.mxu0 %v701_v9  ;;  %669 = vmatpush3.bf16.msra.mxu1 %v701_v9 }
  0x27   : > { %647 = vmatmul.mubr.bf16.vlgmr.msra.gmra.mrb[0].mxu0 %v704_v10  ;;  %651 = vmatmul.mubr.bf16.vlgmr.msra.gmra.mrb[0].mxu1 %v705_v11 }
  0xfa   : > { %v648_v13 = vpop.f32.mrb[0].mxu0  ;;  %v652_v14 = vpop.f32.mrb[0].mxu1 }
  0xfb   : > { %v391_v15 = vadd.f32 %v648_v13, %v587_v12  ;;  %v407_v16 = vadd.f32 %v652_v14, %v587_v12  ;;  %v382_v17 = vpop.f32.mrb[1].mxu0  ;;  %v398_v18 = vpop.f32.mrb[1].mxu1 }
  0xfc   : > { %v383_v19 = vadd.f32 %v587_v12, %v382_v17  ;;  %v399_v20 = vadd.f32 %v587_v12, %v398_v18  ;;  %v649_v21 = vpop.f32.mrb[2].mxu0  ;;  %v653_v22 = vpop.f32.mrb[2].mxu1 }
  0xfd   : > { %v415_v23 = vmax.f32 %v391_v15, 0.0  ;;  %v419_v24 = vmax.f32 %v407_v16, 0.0  ;;  %v394_v25 = vadd.f32 %v649_v21, %v587_v12  ;;  %v410_v26 = vadd.f32 %v653_v22, %v587_v12  ;;  %v385_v27 = vpop.f32.mrb[3].mxu0  ;;  %v401_v28 = vpop.f32.mrb[3].mxu1 }
  0xfe   : > { %v413_v29 = vmax.f32 %v383_v19, 0.0  ;;  %v417_v30 = vmax.f32 %v399_v20, 0.0  ;;  %v386_v31 = vadd.f32 %v587_v12, %v385_v27  ;;  %v402_v32 = vadd.f32 %v587_v12, %v401_v28 }
  0xff   : > { %v612_v33 = vpack.c.bf16 %v415_v23, %v415_v23  ;;  %v616_v34 = vpack.c.bf16 %v419_v24, %v419_v24  ;;  %v416_v35 = vmax.f32 %v394_v25, 0.0  ;;  %v420_v36 = vmax.f32 %v410_v26, 0.0 }
 0x100   : > { %v610_v37 = vpack.c.bf16 %v413_v29, %v413_v29  ;;  %v614_v38 = vpack.c.bf16 %v417_v30, %v417_v30  ;;  %v414_v39 = vmax.f32 %v386_v31, 0.0  ;;  %v418_v40 = vmax.f32 %v402_v32, 0.0 }
 0x101   : > { %456 = vst.msk [vmem:[%s242_s17 + $0x8] sm:$0xf] %vm453_vm0, %v612_v33  ;;  %460 = vst.msk [vmem:[%s242_s17 + $0x18] sm:$0xf] %vm453_vm0, %v616_v34  ;;  %v613_v41 = vpack.c.bf16 %v416_v35, %v416_v35  ;;  %v617_v42 = vpack.c.bf16 %v420_v36, %v420_v36 }
 0x102   : > { %454 = vst.msk [vmem:[%s242_s17] sm:$0xf] %vm453_vm0, %v610_v37  ;;  %458 = vst.msk [vmem:[%s242_s17 + $0x10] sm:$0xf] %vm453_vm0, %v614_v38  ;;  %v611_v43 = vpack.c.bf16 %v414_v39, %v414_v39  ;;  %v615_v44 = vpack.c.bf16 %v418_v40, %v418_v40 }
 0x103   : > { %457 = vst.msk [vmem:[%s242_s17 + $0xc] sm:$0xf] %vm453_vm0, %v613_v41  ;;  %461 = vst.msk [vmem:[%s242_s17 + $0x1c] sm:$0xf] %vm453_vm0, %v617_v42 }
 0x104   : > { %455 = vst.msk [vmem:[%s242_s17 + $0x4] sm:$0xf] %vm453_vm0, %v611_v43  ;;  %459 = vst.msk [vmem:[%s242_s17 + $0x14] sm:$0xf] %vm453_vm0, %v615_v44 }
 0x105 PF: > { %s13_s14 = sadd.s32 1, %s728_s14   ;;  %s835_s12 = smov %s724_s13 }
 0x106   : > { %p10_p5 = scmp.ge.s32.totalorder %s13_s14, 4   ;;  %s836_s13 = smov %s838_s15 }
 0x108   :  { %12 = sbr.rel (!%p10_p5) target bundleno = 2 (0x2), region = 68 }

// kernel: vqvae_forward.13
= control target key start
LH: loop header
LB: loop body
LE: loop exit
PB: predicated region body
PF: predicated region fallthrough
CT: control target
= control target key end

     0   :  { %s713_s12 = smov 0   ;;  %s715_s13 = smov 0   ;;  %s801_s0 = inlined_call_operand.vmem [shape: bf16[1,32,256], index: 0, kind: input, shape index: {}]   ;;  %s802_s1 = inlined_call_operand.vmem [shape: bf16[1,256,128], index: 1, kind: input, shape index: {}]   ;;  %s803_s2 = inlined_call_operand.vmem [shape: f32[1,1,128], index: 2, kind: input, shape index: {}]   ;;  %s804_s3 = inlined_call_operand.vmem [shape: bf16[1,32,32], index: 3, kind: output, shape index: {}]  }
   0x1   :  { %s717_s14 = smov 0  }
   0x2 LB: > { %s22_s15 = sadd.s32 1, %s687_s13  ;;  %p572_p0 = scmp.ge.s32.totalorder %s691_s14, 1  ;;  %s691_s14 = sphi %s717_s14, %s13_s14   ;;  %s687_s13 = sphi %s715_s13, %s806_s13   ;;  %s683_s12 = sphi %s713_s12, %s805_s12  }
   0x3   : > { %p23_p1 = scmp.ge.s32.totalorder %s22_s15, 2  ;;  %p177_p2 = scmp.lt.s32.totalorder %s691_s14, 3 }
   0x5   : > { %s808_s15 = smov (%p23_p1, %s22_s15), 0  ;;  %p178_p3 = pnand %p572_p0, %p177_p2 }
   0x6   : > { %v650_v0 = vld [vmem:[%s802_s1 + $0x40] sm:$0xff] (!%p178_p3)   ;;  %s573_s18 = sshll.u32 (!%p178_p3), %s683_s12, 1  ;;  %v652_v2 = vld [vmem:[%s802_s1 + $0x48] sm:$0xff] (!%p178_p3)   ;;  %v654_v4 = vld [vmem:[%s802_s1 + $0x50] sm:$0xff] (!%p178_p3)   ;;  %vm446_vm0 = vcmask (!%p178_p3), 257024  }
   0x7   : > { %181 = sbr.rel (%p178_p3) target bundleno = 263 (0x107), region = 32  ;;  %v651_v1 = vld [vmem:[%s802_s1] sm:$0xff] (!%p178_p3)   ;;  %604 = vmatprep.subr.bf16.mxu0 (!%p178_p3), %v650_v0  ;;  %v653_v3 = vld [vmem:[%s802_s1 + $0x8] sm:$0xff] (!%p178_p3)   ;;  %p221_p4 = scmp.lt.s32.totalorder (!%p178_p3), %s573_s18, 3  ;;  %v655_v5 = vld [vmem:[%s802_s1 + $0x10] sm:$0xff] (!%p178_p3)  }
   0x8   : > { %605 = vmatpush3.bf16.msra.mxu0 (!%p178_p3), %v651_v1  ;;  %v656_v6 = vld [vmem:[%s802_s1 + $0x58] sm:$0xff] (!%p178_p3)   ;;  %v658_v8 = vld [vmem:[%s802_s1 + $0x60] sm:$0xff] (!%p178_p3)   ;;  %v660_v10 = vld [vmem:[%s802_s1 + $0x68] sm:$0xff] (!%p178_p3)  }
   0x9   : > { %606 = vmatprep.subr.bf16.mxu0 (!%p178_p3), %v652_v2  ;;  %v657_v7 = vld [vmem:[%s802_s1 + $0x18] sm:$0xff] (!%p178_p3)   ;;  %v659_v9 = vld [vmem:[%s802_s1 + $0x20] sm:$0xff] (!%p178_p3)   ;;  %v661_v12 = vld [vmem:[%s802_s1 + $0x28] sm:$0xff] (!%p178_p3)  }
   0xa   : > { %v662_v13 = vld [vmem:[%s802_s1 + $0x70] sm:$0xff] (!%p178_p3)   ;;  %v664_v15 = vld [vmem:[%s802_s1 + $0x78] sm:$0xff] (!%p178_p3)   ;;  %v578_v19 = vld [vmem:[%s803_s2] ss:$0 sm:$0xff] (!%p178_p3) }
   0xb   : > { %v663_v14 = vld [vmem:[%s802_s1 + $0x30] sm:$0xff] (!%p178_p3)   ;;  %v665_v16 = vld [vmem:[%s802_s1 + $0x38] sm:$0xff] (!%p178_p3)  }
   0xc   : > { %607 = vmatpush3.bf16.msra.mxu0 (!%p178_p3), %v653_v3 }
   0xd   : > { %608 = vmatprep.subr.bf16.mxu0 (!%p178_p3), %v654_v4 }
   0xe   : > { %s810_s18 = smov (!%p221_p4, %s573_s18), 3 }
   0xf   : > { %s601_s6 = sshll.u32 %s810_s18, 3  ;;  %s577_s5 = sshll.u32 %s810_s18, 2 }
  0x10   : > { %609 = vmatpush3.bf16.msra.mxu0 %v655_v5  ;;  %s227_s11 = scalar_lea.vmem %s801_s0, %s601_s6  ;;  %s245_s8 = scalar_lea.vmem %s804_s3, %s577_s5 }
  0x11   : > { %610 = vmatprep.subr.bf16.mxu0 %v656_v6  ;;  %v668_v11 = vld [vmem:[%s227_s11 + $0x4] ss:$8 sps:$4 sm:$0xff]   ;;  %v666_v17 = vld [vmem:[%s227_s11] ss:$8 sps:$4 sm:$0xff]  }
  0x12   : > { %427 = vmatprep.mubr.bf16.mxu0 %v668_v11 }
  0x14   : > { %611 = vmatpush3.bf16.msra.mxu0 %v657_v7 }
  0x15   : > { %612 = vmatprep.subr.bf16.mxu0 %v658_v8 }
  0x18   : > { %613 = vmatpush3.bf16.msra.mxu0 %v659_v9 }
  0x19   : > { %614 = vmatprep.subr.bf16.mxu0 %v660_v10 }
  0x1c   : > { %615 = vmatpush3.bf16.msra.mxu0 %v661_v12 }
  0x1d   : > { %616 = vmatprep.subr.bf16.mxu0 %v662_v13 }
  0x20   : > { %617 = vmatpush3.bf16.msra.mxu0 %v663_v14 }
  0x21   : > { %618 = vmatprep.subr.bf16.mxu0 %v664_v15 }
  0x24   : > { %619 = vmatpush3.bf16.msra.mxu0 %v665_v16 }
  0x27   : > { %428 = vmatmul.mubr.bf16.vlgmr.msra.gmra.mrb[0].mxu0 %v666_v17 }
  0xfa   : > { %v620_v18 = vpop.f32.mrb[0].mxu0 }
  0xfb   : > { %v621_v20 = vpop.f32.mrb[1].mxu0 }
  0xfc   : > { %v622_v21 = vadd.f32 %v621_v20, %v620_v18  ;;  %v623_v22 = vpop.f32.mrb[2].mxu0 }
  0xfd   : > { %v624_v23 = vpop.f32.mrb[3].mxu0 }
  0xfe   : > { %v430_v24 = vadd.f32 %v622_v21, %v578_v19  ;;  %v625_v25 = vadd.f32 %v624_v23, %v623_v22 }
 0x100   : > { %v436_v26 = vmax.f32 %v430_v24, 0.0  ;;  %v433_v27 = vadd.f32 %v625_v25, %v578_v19 }
 0x102   : > { %v602_v28 = vpack.c.bf16 %v436_v26, %v436_v26  ;;  %v437_v29 = vmax.f32 %v433_v27, 0.0 }
 0x104   : > { %447 = vst.msk [vmem:[%s245_s8] sm:$0xf] %vm446_vm0, %v602_v28  ;;  %v603_v30 = vpack.c.bf16 %v437_v29, %v437_v29 }
 0x106   : > { %448 = vst.msk [vmem:[%s245_s8 + $0x4] sm:$0xf] %vm446_vm0, %v603_v30 }
 0x107 PF: > { %s13_s14 = sadd.s32 1, %s691_s14   ;;  %s805_s12 = smov %s687_s13 }
 0x108   : > { %p10_p5 = scmp.ge.s32.totalorder %s13_s14, 4   ;;  %s806_s13 = smov %s808_s15 }
 0x10a   :  { %12 = sbr.rel (!%p10_p5) target bundleno = 2 (0x2), region = 68 }

// kernel: vqvae_forward.14
= control target key start
LH: loop header
LB: loop body
LE: loop exit
PB: predicated region body
PF: predicated region fallthrough
CT: control target
= control target key end

     0   :  { %s874_s12 = smov 0   ;;  %s876_s13 = smov 0   ;;  %s989_s0 = inlined_call_operand.vmem [shape: bf16[1,32,384], index: 0, kind: input, shape index: {}]   ;;  %s990_s1 = inlined_call_operand.vmem [shape: bf16[1,384,128], index: 1, kind: input, shape index: {}]   ;;  %s991_s2 = inlined_call_operand.vmem [shape: f32[1,1,128], index: 2, kind: input, shape index: {}]   ;;  %s992_s3 = inlined_call_operand.vmem [shape: bf16[1,32,32], index: 3, kind: output, shape index: {}]  }
   0x1   :  { %s878_s14 = smov 0  }
   0x2 LB: > { %s22_s15 = sadd.s32 1, %s846_s13  ;;  %p683_p0 = scmp.ge.s32.totalorder %s850_s14, 1  ;;  %s850_s14 = sphi %s878_s14, %s13_s14   ;;  %s846_s13 = sphi %s876_s13, %s994_s13   ;;  %s842_s12 = sphi %s874_s12, %s993_s12  }
   0x3   : > { %p23_p1 = scmp.ge.s32.totalorder %s22_s15, 2  ;;  %p177_p2 = scmp.lt.s32.totalorder %s850_s14, 3 }
   0x5   : > { %s996_s15 = smov (%p23_p1, %s22_s15), 0  ;;  %p178_p3 = pnand %p683_p0, %p177_p2 }
   0x6   : > { %v800_v0 = vld [vmem:[%s990_s1 + $0x40] sm:$0xff] (!%p178_p3)   ;;  %v852_v2 = vmov (!%p178_p3), 0.0   ;;  %v803_v4 = vld [vmem:[%s990_s1 + $0x48] sm:$0xff] (!%p178_p3)   ;;  %vm853_vm0 = vmmov (!%p178_p3), 0   ;;  %v806_v7 = vld [vmem:[%s990_s1 + $0x50] sm:$0xff] (!%p178_p3)   ;;  %s684_s30 = sshll.u32 (!%p178_p3), %s842_s12, 1 }
   0x7   : > { %181 = sbr.rel (%p178_p3) target bundleno = 263 (0x107), region = 32  ;;  %v801_v1 = vld [vmem:[%s990_s1] sm:$0xff] (!%p178_p3)   ;;  %753 = vmatprep.subr.bf16.mxu1 (!%p178_p3), %v852_v2  ;;  %722 = vmatprep.subr.bf16.mxu0 (!%p178_p3), %v800_v0  ;;  %v804_v5 = vld [vmem:[%s990_s1 + $0x8] sm:$0xff] (!%p178_p3)   ;;  %v807_v8 = vld [vmem:[%s990_s1 + $0x10] sm:$0xff] (!%p178_p3)   ;;  %p221_p4 = scmp.lt.s32.totalorder (!%p178_p3), %s684_s30, 3  ;;  %vm557_vm1 = vcmask (!%p178_p3), 257024  }
   0x8   : > { %v802_v3 = vld [vmem:[%s990_s1 + $0x80] sm:$0xff] (!%p178_p3)   ;;  %723 = vmatpush3.bf16.msra.mxu0 (!%p178_p3), %v801_v1  ;;  %769 = vmatprep.mubr.msk.bf16.mxu1 (!%p178_p3), %vm853_vm0, %v852_v2  ;;  %v805_v6 = vld [vmem:[%s990_s1 + $0x88] sm:$0xff] (!%p178_p3)   ;;  %v808_v9 = vld [vmem:[%s990_s1 + $0x90] sm:$0xff] (!%p178_p3)  }
   0x9   : > { %754 = vmatpush3.bf16.msra.mxu1 (!%p178_p3), %v802_v3  ;;  %724 = vmatprep.subr.bf16.mxu0 (!%p178_p3), %v803_v4  ;;  %v809_v10 = vld [vmem:[%s990_s1 + $0x58] sm:$0xff] (!%p178_p3)   ;;  %v812_v13 = vld [vmem:[%s990_s1 + $0x60] sm:$0xff] (!%p178_p3)   ;;  %v815_v16 = vld [vmem:[%s990_s1 + $0x68] sm:$0xff] (!%p178_p3)  }
   0xa   : > { %755 = vmatprep.subr.bf16.mxu1 (!%p178_p3), %v852_v2  ;;  %v810_v11 = vld [vmem:[%s990_s1 + $0x18] sm:$0xff] (!%p178_p3)   ;;  %v813_v14 = vld [vmem:[%s990_s1 + $0x20] sm:$0xff] (!%p178_p3)   ;;  %v816_v17 = vld [vmem:[%s990_s1 + $0x28] sm:$0xff] (!%p178_p3)  }
   0xb   : > { %v811_v12 = vld [vmem:[%s990_s1 + $0x98] sm:$0xff] (!%p178_p3)   ;;  %v814_v15 = vld [vmem:[%s990_s1 + $0xa0] sm:$0xff] (!%p178_p3)   ;;  %v817_v18 = vld [vmem:[%s990_s1 + $0xa8] sm:$0xff] (!%p178_p3)  }
   0xc   : > { %725 = vmatpush3.bf16.msra.mxu0 (!%p178_p3), %v804_v5  ;;  %v818_v19 = vld [vmem:[%s990_s1 + $0x70] sm:$0xff] (!%p178_p3)   ;;  %v821_v22 = vld [vmem:[%s990_s1 + $0x78] sm:$0xff] (!%p178_p3)   ;;  %v688_v30 = vld [vmem:[%s991_s2] ss:$0 sm:$0xff] (!%p178_p3) }
   0xd   : > { %756 = vmatpush3.bf16.msra.mxu1 (!%p178_p3), %v805_v6  ;;  %726 = vmatprep.subr.bf16.mxu0 (!%p178_p3), %v806_v7  ;;  %v819_v20 = vld [vmem:[%s990_s1 + $0x30] sm:$0xff] (!%p178_p3)   ;;  %v822_v24 = vld [vmem:[%s990_s1 + $0x38] sm:$0xff] (!%p178_p3)  }
   0xe   : > { %757 = vmatprep.subr.bf16.mxu1 %v852_v2  ;;  %s998_s30 = smov (!%p221_p4, %s684_s30), 3  ;;  %v820_v21 = vld [vmem:[%s990_s1 + $0xb0] sm:$0xff]   ;;  %v826_v25 = vld [vmem:[%s990_s1 + $0xb8] sm:$0xff]  }
   0xf   : > { %s773_s25 = smul.u32 12, %s998_s30  ;;  %s687_s24 = sshll.u32 %s998_s30, 2 }
  0x10   : > { %727 = vmatpush3.bf16.msra.mxu0 %v807_v8  ;;  %s245_s27 = scalar_lea.vmem %s992_s3, %s687_s24 }
  0x11   : > { %758 = vmatpush3.bf16.msra.mxu1 %v808_v9  ;;  %728 = vmatprep.subr.bf16.mxu0 %v809_v10  ;;  %s227_s10 = scalar_lea.vmem %s989_s0, %s773_s25 }
  0x12   : > { %759 = vmatprep.subr.bf16.mxu1 %v852_v2  ;;  %v825_v23 = vld [vmem:[%s227_s10 + $0x4] ss:$12 sps:$4 sm:$0xff]   ;;  %v823_v26 = vld [vmem:[%s227_s10] ss:$12 sps:$4 sm:$0xff]   ;;  %v827_v27 = vld [vmem:[%s227_s10 + $0x8] ss:$12 sps:$4 sm:$0xff]  }
  0x13   : > { %499 = vmatprep.mubr.bf16.mxu0 %v825_v23 }
  0x14   : > { %729 = vmatpush3.bf16.msra.mxu0 %v810_v11 }
  0x15   : > { %760 = vmatpush3.bf16.msra.mxu1 %v811_v12  ;;  %730 = vmatprep.subr.bf16.mxu0 %v812_v13 }
  0x16   : > { %761 = vmatprep.subr.bf16.mxu1 %v852_v2 }
  0x18   : > { %731 = vmatpush3.bf16.msra.mxu0 %v813_v14 }
  0x19   : > { %762 = vmatpush3.bf16.msra.mxu1 %v814_v15  ;;  %732 = vmatprep.subr.bf16.mxu0 %v815_v16 }
  0x1a   : > { %763 = vmatprep.subr.bf16.mxu1 %v852_v2 }
  0x1c   : > { %733 = vmatpush3.bf16.msra.mxu0 %v816_v17 }
  0x1d   : > { %764 = vmatpush3.bf16.msra.mxu1 %v817_v18  ;;  %734 = vmatprep.subr.bf16.mxu0 %v818_v19 }
  0x1e   : > { %765 = vmatprep.subr.bf16.mxu1 %v852_v2 }
  0x20   : > { %735 = vmatpush3.bf16.msra.mxu0 %v819_v20 }
  0x21   : > { %766 = vmatpush3.bf16.msra.mxu1 %v820_v21  ;;  %736 = vmatprep.subr.bf16.mxu0 %v821_v22 }
  0x22   : > { %767 = vmatprep.subr.bf16.mxu1 %v852_v2 }
  0x24   : > { %737 = vmatpush3.bf16.msra.mxu0 %v822_v24 }
  0x25   : > { %768 = vmatpush3.bf16.msra.mxu1 %v826_v25 }
  0x27   : > { %500 = vmatmul.mubr.bf16.vlgmr.msra.gmra.mrb[0].mxu0 %v823_v26 }
  0x28   : > { %770 = vmatmul.mubr.bf16.vlgmr.msra.gmra.mrb[0].mxu1 %v827_v27 }
  0xfa   : > { %v738_v28 = vpop.f32.mrb[0].mxu0 }
  0xfb   : > { %v739_v29 = vpop.f32.mrb[1].mxu0  ;;  %v542_v31 = vpop.f32.mrb[0].mxu1 }
  0xfc   : > { %v740_v32 = vadd.f32 %v739_v29, %v738_v28  ;;  %v741_v33 = vpop.f32.mrb[2].mxu0  ;;  %v771_v34 = vpop.f32.mrb[1].mxu1 }
  0xfd   : > { %v742_v35 = vpop.f32.mrb[3].mxu0  ;;  %v545_v36 = vpop.f32.mrb[2].mxu1 }
  0xfe   : > { %v502_v37 = vadd.f32 %v740_v32, %v688_v30  ;;  %v743_v38 = vadd.f32 %v742_v35, %v741_v33  ;;  %v772_v39 = vpop.f32.mrb[3].mxu1 }
 0x100   : > { %v543_v40 = vadd.f32 %v542_v31, %v502_v37  ;;  %v505_v41 = vadd.f32 %v743_v38, %v688_v30 }
 0x102   : > { %v720_v42 = vpack.c.bf16 %v543_v40, %v543_v40  ;;  %v546_v43 = vadd.f32 %v545_v36, %v505_v41 }
 0x104   : > { %558 = vst.msk [vmem:[%s245_s27] sm:$0xf] %vm557_vm1, %v720_v42  ;;  %v721_v44 = vpack.c.bf16 %v546_v43, %v546_v43 }
 0x106   : > { %559 = vst.msk [vmem:[%s245_s27 + $0x4] sm:$0xf] %vm557_vm1, %v721_v44 }
 0x107 PF: > { %s13_s14 = sadd.s32 1, %s850_s14   ;;  %s993_s12 = smov %s846_s13 }
 0x108   : > { %p10_p5 = scmp.ge.s32.totalorder %s13_s14, 4   ;;  %s994_s13 = smov %s996_s15 }
 0x10a   :  { %12 = sbr.rel (!%p10_p5) target bundleno = 2 (0x2), region = 68 }

// kernel: vqvae_forward.17
= control target key start
LH: loop header
LB: loop body
LE: loop exit
PB: predicated region body
PF: predicated region fallthrough
CT: control target
= control target key end

     0   :  { %s617_s12 = smov 0   ;;  %s619_s13 = smov 0   ;;  %s677_s0 = inlined_call_operand.vmem [shape: bf16[1,32,128], index: 0, kind: input, shape index: {}]   ;;  %s678_s1 = inlined_call_operand.vmem [shape: bf16[1,128,128], index: 1, kind: input, shape index: {}]   ;;  %s679_s2 = inlined_call_operand.vmem [shape: f32[1,1,128], index: 2, kind: input, shape index: {}]   ;;  %s680_s3 = inlined_call_operand.vmem [shape: f32[1,32,128], index: 3, kind: output, shape index: {}]  }
   0x1   :  { %s621_s14 = smov 0  }
   0x2 LB: > { %s22_s15 = sadd.s32 1, %s588_s13  ;;  %p489_p0 = scmp.ge.s32.totalorder %s592_s14, 1  ;;  %s592_s14 = sphi %s621_s14, %s13_s14   ;;  %s588_s13 = sphi %s619_s13, %s682_s13   ;;  %s584_s12 = sphi %s617_s12, %s681_s12  }
   0x3   : > { %p23_p1 = scmp.ge.s32.totalorder %s22_s15, 2  ;;  %p176_p2 = scmp.lt.s32.totalorder %s592_s14, 3 }
   0x5   : > { %s684_s15 = smov (%p23_p1, %s22_s15), 0  ;;  %p177_p3 = pnand %p489_p0, %p176_p2 }
   0x6   : > { %v562_v0 = vld [vmem:[%s678_s1] sm:$0xff] (!%p177_p3)   ;;  %v594_v1 = vmov (!%p177_p3), 0.0   ;;  %v563_v2 = vld [vmem:[%s678_s1 + $0x8] sm:$0xff] (!%p177_p3)   ;;  %vm595_vm0 = vmmov (!%p177_p3), 0   ;;  %s490_s20 = sshll.u32 (!%p177_p3), %s584_s12, 1  ;;  %v564_v3 = vld [vmem:[%s678_s1 + $0x10] sm:$0xff] (!%p177_p3)  }
   0x7   : > { %180 = sbr.rel (%p177_p3) target bundleno = 256 (0x100), region = 32  ;;  %515 = vmatprep.subr.bf16.mxu0 (!%p177_p3), %v594_v1  ;;  %531 = vmatprep.mubr.msk.bf16.mxu0 (!%p177_p3), %vm595_vm0, %v594_v1  ;;  %p219_p4 = scmp.lt.s32.totalorder (!%p177_p3), %s490_s20, 3  ;;  %v565_v4 = vld [vmem:[%s678_s1 + $0x18] sm:$0xff] (!%p177_p3)   ;;  %v566_v5 = vld [vmem:[%s678_s1 + $0x20] sm:$0xff] (!%p177_p3)   ;;  %v567_v6 = vld [vmem:[%s678_s1 + $0x28] sm:$0xff] (!%p177_p3)   ;;  %v596_v10 = vmov (!%p177_p3), 0  }
   0x8   : > { %516 = vmatpush3.bf16.msra.mxu0 (!%p177_p3), %v562_v0  ;;  %v568_v7 = vld [vmem:[%s678_s1 + $0x30] sm:$0xff] (!%p177_p3)   ;;  %v569_v13 = vld [vmem:[%s678_s1 + $0x38] sm:$0xff] (!%p177_p3)   ;;  %v494_v15 = vld [vmem:[%s679_s2] ss:$0 sm:$0xff] (!%p177_p3) }
   0x9   : > { %517 = vmatprep.subr.bf16.mxu0 (!%p177_p3), %v594_v1 }
   0xc   : > { %518 = vmatpush3.bf16.msra.mxu0 (!%p177_p3), %v563_v2 }
   0xd   : > { %519 = vmatprep.subr.bf16.mxu0 (!%p177_p3), %v594_v1 }
   0xe   : > { %s686_s20 = smov (!%p219_p4, %s490_s20), 3 }
   0xf   : > { %s491_s27 = sshll.u32 %s686_s20, 2  ;;  %s493_s10 = sshll.u32 %s686_s20, 3 }
  0x10   : > { %520 = vmatpush3.bf16.msra.mxu0 %v564_v3  ;;  %s224_s5 = scalar_lea.vmem %s677_s0, %s491_s27  ;;  %s242_s18 = scalar_lea.vmem %s680_s3, %s493_s10 }
  0x11   : > { %521 = vmatprep.subr.bf16.mxu0 %v594_v1  ;;  %v245_v8 = vld [vmem:[%s224_s5] sm:$0xf]  ;;  %v246_v9 = vld [vmem:[%s224_s5 + $0x4] sm:$0xf] }
  0x12   : > { %v247_v11 = vmax.bf16 %v596_v10, %v245_v8  ;;  %v248_v12 = vmax.bf16 %v596_v10, %v246_v9 }
  0x14   : > { %522 = vmatpush3.bf16.msra.mxu0 %v565_v4  ;;  %v495_v14 = vcombine.low %v247_v11, %v248_v12 }
  0x15   : > { %523 = vmatprep.subr.bf16.mxu0 %v594_v1 }
  0x18   : > { %524 = vmatpush3.bf16.msra.mxu0 %v566_v5 }
  0x19   : > { %525 = vmatprep.subr.bf16.mxu0 %v594_v1 }
  0x1c   : > { %526 = vmatpush3.bf16.msra.mxu0 %v567_v6 }
  0x1d   : > { %527 = vmatprep.subr.bf16.mxu0 %v594_v1 }
  0x20   : > { %528 = vmatpush3.bf16.msra.mxu0 %v568_v7 }
  0x21   : > { %529 = vmatprep.subr.bf16.mxu0 %v594_v1 }
  0x24   : > { %530 = vmatpush3.bf16.msra.mxu0 %v569_v13 }
  0x27   : > { %532 = vmatmul.mubr.bf16.vlgmr.msra.gmra.mrb[0].mxu0 %v495_v14 }
  0xfa   : > { %v360_v16 = vpop.f32.mrb[0].mxu0 }
  0xfb   : > { %v361_v17 = vadd.f32 %v494_v15, %v360_v16  ;;  %v533_v18 = vpop.f32.mrb[1].mxu0 }
  0xfc   : > { %v363_v19 = vpop.f32.mrb[2].mxu0 }
  0xfd   : > { %367 = vst [vmem:[%s242_s18] sm:$0xff] %v361_v17  ;;  %v364_v20 = vadd.f32 %v494_v15, %v363_v19  ;;  %v534_v21 = vpop.f32.mrb[3].mxu0 }
  0xff   : > { %368 = vst [vmem:[%s242_s18 + $0x8] sm:$0xff] %v364_v20 }
 0x100 PF: > { %s13_s14 = sadd.s32 1, %s592_s14   ;;  %s681_s12 = smov %s588_s13 }
 0x101   : > { %p10_p5 = scmp.ge.s32.totalorder %s13_s14, 4   ;;  %s682_s13 = smov %s684_s15 }
 0x103   :  { %12 = sbr.rel (!%p10_p5) target bundleno = 2 (0x2), region = 68 }

// kernel: vqvae_forward.15
= control target key start
LH: loop header
LB: loop body
LE: loop exit
PB: predicated region body
PF: predicated region fallthrough
CT: control target
= control target key end

     0   :  { %s934_s15 = smov 0   ;;  %s1074_s0 = inlined_call_operand.vmem [shape: bf16[32,384], index: 0, kind: input, shape index: {}]   ;;  %s1075_s1 = inlined_call_operand.vmem [shape: bf16[384,128], index: 1, kind: input, shape index: {}]   ;;  %s1076_s2 = inlined_call_operand.vmem [shape: bf16[128,128], index: 2, kind: input, shape index: {}]   ;;  %s1077_s3 = inlined_call_operand.vmem [shape: bf16[32,32], index: 3, kind: input, shape index: {}]   ;;  %s1078_s4 = inlined_call_operand.vmem [shape: bf16[32,32], index: 4, kind: output, shape index: {}]  }
   0x1 LB: > { %s718_s16 = sadd.s32 4294967295, %s904_s15   ;;  %p722_p0 = scmp.ge.s32.totalorder %s904_s15, 1  ;;  %s904_s15 = sphi %s934_s15, %s14_s15  }
   0x2   : > { %p175_p1 = scmp.lt.s32.totalorder %s904_s15, 3 }
   0x4   : > { %p176_p2 = pnand %p722_p0, %p175_p1 }
   0x5   : > { %v866_v0 = vld [vmem:[%s1075_s1 + $0x40] sm:$0xff] (!%p176_p2)   ;;  %v906_v1 = vmov (!%p176_p2), 0.0   ;;  %v869_v4 = vld [vmem:[%s1075_s1 + $0x48] sm:$0xff] (!%p176_p2)   ;;  %v872_v7 = vld [vmem:[%s1075_s1 + $0x50] sm:$0xff] (!%p176_p2)   ;;  %s723_s5 = sshll.u32 (!%p176_p2), %s718_s16, 1  ;;  %vm907_vm0 = vmmov (!%p176_p2), 0  }
   0x6   : > { %179 = sbr.rel (%p176_p2) target bundleno = 480 (0x1e0), region = 36  ;;  %814 = vmatprep.subr.bf16.mxu1 (!%p176_p2), %v906_v1  ;;  %v867_v2 = vld [vmem:[%s1075_s1] sm:$0xff] (!%p176_p2)   ;;  %774 = vmatprep.subr.bf16.mxu0 (!%p176_p2), %v866_v0  ;;  %v870_v5 = vld [vmem:[%s1075_s1 + $0x8] sm:$0xff] (!%p176_p2)   ;;  %v873_v8 = vld [vmem:[%s1075_s1 + $0x10] sm:$0xff] (!%p176_p2)   ;;  %p208_p3 = scmp.lt.s32.totalorder (!%p176_p2), %s723_s5, 3  ;;  %v908_v26 = vmov (!%p176_p2), 0  }
   0x7   : > { %v868_v3 = vld [vmem:[%s1075_s1 + $0x80] sm:$0xff] (!%p176_p2)   ;;  %775 = vmatpush3.bf16.msra.mxu0 (!%p176_p2), %v867_v2  ;;  %v871_v6 = vld [vmem:[%s1075_s1 + $0x88] sm:$0xff] (!%p176_p2)   ;;  %830 = vmatprep.mubr.msk.bf16.mxu1 (!%p176_p2), %vm907_vm0, %v906_v1  ;;  %v874_v9 = vld [vmem:[%s1075_s1 + $0x90] sm:$0xff] (!%p176_p2)   ;;  %vm647_vm1 = vcmask (!%p176_p2), 257024  }
   0x8   : > { %815 = vmatpush3.bf16.msra.mxu1 (!%p176_p2), %v868_v3  ;;  %776 = vmatprep.subr.bf16.mxu0 (!%p176_p2), %v869_v4  ;;  %v875_v10 = vld [vmem:[%s1075_s1 + $0x58] sm:$0xff] (!%p176_p2)   ;;  %v878_v13 = vld [vmem:[%s1075_s1 + $0x60] sm:$0xff] (!%p176_p2)   ;;  %v881_v16 = vld [vmem:[%s1075_s1 + $0x68] sm:$0xff] (!%p176_p2)  }
   0x9   : > { %816 = vmatprep.subr.bf16.mxu1 (!%p176_p2), %v906_v1  ;;  %v876_v11 = vld [vmem:[%s1075_s1 + $0x18] sm:$0xff] (!%p176_p2)   ;;  %v879_v14 = vld [vmem:[%s1075_s1 + $0x20] sm:$0xff] (!%p176_p2)   ;;  %v882_v17 = vld [vmem:[%s1075_s1 + $0x28] sm:$0xff] (!%p176_p2)  }
   0xa   : > { %v877_v12 = vld [vmem:[%s1075_s1 + $0x98] sm:$0xff] (!%p176_p2)   ;;  %v880_v15 = vld [vmem:[%s1075_s1 + $0xa0] sm:$0xff] (!%p176_p2)   ;;  %v883_v18 = vld [vmem:[%s1075_s1 + $0xa8] sm:$0xff] (!%p176_p2)  }
   0xb   : > { %777 = vmatpush3.bf16.msra.mxu0 (!%p176_p2), %v870_v5  ;;  %v884_v19 = vld [vmem:[%s1075_s1 + $0x70] sm:$0xff] (!%p176_p2)   ;;  %v887_v22 = vld [vmem:[%s1075_s1 + $0x78] sm:$0xff] (!%p176_p2)   ;;  %v890_v36 = vld [vmem:[%s1076_s2] sm:$0xff] (!%p176_p2)  }
   0xc   : > { %817 = vmatpush3.bf16.msra.mxu1 (!%p176_p2), %v871_v6  ;;  %778 = vmatprep.subr.bf16.mxu0 (!%p176_p2), %v872_v7  ;;  %v885_v20 = vld [vmem:[%s1075_s1 + $0x30] sm:$0xff] (!%p176_p2)   ;;  %v888_v30 = vld [vmem:[%s1075_s1 + $0x38] sm:$0xff] (!%p176_p2)   ;;  %v891_v38 = vld [vmem:[%s1076_s2 + $0x8] sm:$0xff] (!%p176_p2)  }
   0xd   : > { %818 = vmatprep.subr.bf16.mxu1 %v906_v1  ;;  %s1080_s5 = smov (!%p208_p3, %s723_s5), 3  ;;  %v886_v21 = vld [vmem:[%s1075_s1 + $0xb0] sm:$0xff]   ;;  %v889_v34 = vld [vmem:[%s1075_s1 + $0xb8] sm:$0xff]   ;;  %v894_v41 = vld [vmem:[%s1076_s2 + $0x20] sm:$0xff]  }
   0xe   : > { %s854_s25 = smul.u32 12, %s1080_s5  ;;  %v892_v39 = vld [vmem:[%s1076_s2 + $0x10] sm:$0xff]   ;;  %v893_v40 = vld [vmem:[%s1076_s2 + $0x18] sm:$0xff]   ;;  %v895_v42 = vld [vmem:[%s1076_s2 + $0x28] sm:$0xff]   ;;  %s726_s12 = sshll.u32 %s1080_s5, 2 }
   0xf   : > { %779 = vmatpush3.bf16.msra.mxu0 %v873_v8  ;;  %v896_v43 = vld [vmem:[%s1076_s2 + $0x30] sm:$0xff]   ;;  %v897_v44 = vld [vmem:[%s1076_s2 + $0x38] sm:$0xff]   ;;  %s218_s16 = scalar_lea.vmem %s1077_s3, %s726_s12  ;;  %s224_s19 = scalar_lea.vmem %s1078_s4, %s726_s12 }
  0x10   : > { %819 = vmatpush3.bf16.msra.mxu1 %v874_v9  ;;  %780 = vmatprep.subr.bf16.mxu0 %v875_v10  ;;  %s212_s11 = scalar_lea.vmem %s1074_s0, %s854_s25  ;;  %v771_v60 = vld [vmem:[%s218_s16] sm:$0xff]  }
  0x11   : > { %820 = vmatprep.subr.bf16.mxu1 %v906_v1  ;;  %v227_v23 = vld [vmem:[%s212_s11] sm:$0xff]  ;;  %v229_v24 = vld [vmem:[%s212_s11 + $0xc] sm:$0xff]  ;;  %v228_v25 = vld [vmem:[%s212_s11 + $0x8] sm:$0xf]  ;;  %v772_v61 = vunpack.c.l.bf16 %v771_v60  ;;  %v773_v62 = vunpack.c.h.bf16 %v771_v60 }
  0x12   : > { %v231_v27 = vmax.bf16 %v908_v26, %v227_v23  ;;  %v233_v28 = vmax.bf16 %v908_v26, %v229_v24  ;;  %v230_v29 = vld [vmem:[%s212_s11 + $0x14] sm:$0xf]  ;;  %v232_v32 = vmax.bf16 %v908_v26, %v228_v25 }
  0x13   : > { %781 = vmatpush3.bf16.msra.mxu0 %v876_v11  ;;  %v234_v33 = vmax.bf16 %v908_v26, %v230_v29 }
  0x14   : > { %821 = vmatpush3.bf16.msra.mxu1 %v877_v12  ;;  %782 = vmatprep.subr.bf16.mxu0 %v878_v13  ;;  %v730_v31 = vcombine.high %v231_v27, %v233_v28  ;;  %v729_v35 = vcombine.low %v231_v27, %v233_v28 }
  0x15   : > { %822 = vmatprep.subr.bf16.mxu1 %v906_v1  ;;  %v731_v37 = vcombine.low %v232_v32, %v234_v33 }
  0x16   : > { %475 = vmatprep.mubr.bf16.mxu0 %v730_v31 }
  0x17   : > { %783 = vmatpush3.bf16.msra.mxu0 %v879_v14 }
  0x18   : > { %823 = vmatpush3.bf16.msra.mxu1 %v880_v15  ;;  %784 = vmatprep.subr.bf16.mxu0 %v881_v16 }
  0x19   : > { %824 = vmatprep.subr.bf16.mxu1 %v906_v1 }
  0x1b   : > { %785 = vmatpush3.bf16.msra.mxu0 %v882_v17 }
  0x1c   : > { %825 = vmatpush3.bf16.msra.mxu1 %v883_v18  ;;  %786 = vmatprep.subr.bf16.mxu0 %v884_v19 }
  0x1d   : > { %826 = vmatprep.subr.bf16.mxu1 %v906_v1 }
  0x1f   : > { %787 = vmatpush3.bf16.msra.mxu0 %v885_v20 }
  0x20   : > { %827 = vmatpush3.bf16.msra.mxu1 %v886_v21  ;;  %788 = vmatprep.subr.bf16.mxu0 %v887_v22 }
  0x21   : > { %828 = vmatprep.subr.bf16.mxu1 %v906_v1 }
  0x23   : > { %789 = vmatpush3.bf16.msra.mxu0 %v888_v30 }
  0x24   : > { %829 = vmatpush3.bf16.msra.mxu1 %v889_v34  ;;  %834 = vmatprep.subr.bf16.mxu0 %v906_v1 }
  0x26   : > { %476 = vmatmul.mubr.bf16.vlgmr.msra.gmra.mrb[0].mxu0 %v729_v35 }
  0x27   : > { %831 = vmatmul.mubr.bf16.vlgmr.msra.gmra.mrb[0].mxu1 %v731_v37  ;;  %835 = vmatpush3.bf16.msra.mxu0 %v890_v36 }
  0x28   : > { %836 = vmatprep.subr.bf16.mxu0 %v906_v1  ;;  %850 = vmatprep.mubr.msk.bf16.mxu0 %vm907_vm0, %v906_v1 }
  0x2b   : > { %837 = vmatpush3.bf16.msra.mxu0 %v891_v38 }
  0x2c   : > { %838 = vmatprep.subr.bf16.mxu0 %v906_v1 }
  0x2f   : > { %839 = vmatpush3.bf16.msra.mxu0 %v892_v39 }
  0x30   : > { %840 = vmatprep.subr.bf16.mxu0 %v906_v1 }
  0x33   : > { %841 = vmatpush3.bf16.msra.mxu0 %v893_v40 }
  0x34   : > { %842 = vmatprep.subr.bf16.mxu0 %v906_v1 }
  0x37   : > { %843 = vmatpush3.bf16.msra.mxu0 %v894_v41 }
  0x38   : > { %844 = vmatprep.subr.bf16.mxu0 %v906_v1 }
  0x3b   : > { %845 = vmatpush3.bf16.msra.mxu0 %v895_v42 }
  0x3c   : > { %846 = vmatprep.subr.bf16.mxu0 %v906_v1 }
  0x3f   : > { %847 = vmatpush3.bf16.msra.mxu0 %v896_v43 }
  0x40   : > { %848 = vmatprep.subr.bf16.mxu0 %v906_v1 }
  0x43   : > { %849 = vmatpush3.bf16.msra.mxu0 %v897_v44 }
  0xf9   : > { %v790_v45 = vpop.f32.mrb[0].mxu0 }
  0xfa   : > { %v518_v46 = vpop.f32.mrb[0].mxu1  ;;  %v791_v47 = vpop.f32.mrb[1].mxu0 }
  0xfb   : > { %v792_v48 = vadd.f32 %v791_v47, %v790_v45  ;;  %v832_v49 = vpop.f32.mrb[1].mxu1  ;;  %v793_v50 = vpop.f32.mrb[2].mxu0 }
  0xfc   : > { %v521_v51 = vpop.f32.mrb[2].mxu1  ;;  %v794_v52 = vpop.f32.mrb[3].mxu0 }
  0xfd   : > { %v519_v53 = vadd.f32 %v792_v48, %v518_v46  ;;  %v795_v54 = vadd.f32 %v794_v52, %v793_v50  ;;  %v833_v55 = vpop.f32.mrb[3].mxu1 }
  0xff   : > { %v522_v56 = vadd.f32 %v795_v54, %v521_v51  ;;  %v525_v57 = vmax.f32 %v519_v53, 0.0 }
 0x101   : > { %v526_v58 = vmax.f32 %v522_v56, 0.0 }
 0x103   : > { %v527_v59 = vpack.c.bf16 %v526_v58, %v525_v57 }
 0x105   : > { %851 = vmatmul.mubr.bf16.vlgmr.msra.gmra.mrb[4].mxu0 %v527_v59 }
 0x1d8   : > { %v626_v63 = vpop.f32.mrb[4].mxu0 }
 0x1d9   : > { %v637_v0 = vadd.f32 %v772_v61, %v626_v63  ;;  %v852_v1 = vpop.f32.mrb[5].mxu0 }
 0x1da   : > { %v629_v2 = vpop.f32.mrb[6].mxu0 }
 0x1db   : > { %v768_v3 = vpack.c.bf16 %v637_v0, %v637_v0  ;;  %v638_v4 = vadd.f32 %v773_v62, %v629_v2  ;;  %v853_v5 = vpop.f32.mrb[7].mxu0 }
 0x1dd   : > { %648 = vst.msk [vmem:[%s224_s19] sm:$0xf] %vm647_vm1, %v768_v3  ;;  %v769_v6 = vpack.c.bf16 %v638_v4, %v638_v4 }
 0x1df   : > { %649 = vst.msk [vmem:[%s224_s19 + $0x4] sm:$0xf] %vm647_vm1, %v769_v6 }
 0x1e0 PF: > { %s14_s15 = sadd.s32 1, %s904_s15  }
 0x1e1   : > { %p11_p4 = scmp.ge.s32.totalorder %s14_s15, 4  }
 0x1e3   :  { %13 = sbr.rel (!%p11_p4) target bundleno = 1 (0x1), region = 69 }

// kernel: vqvae_forward.18
= control target key start
LH: loop header
LB: loop body
LE: loop exit
PB: predicated region body
PF: predicated region fallthrough
CT: control target
= control target key end

     0   :  { %12 = vsyncpa [#allocation5], 0  ;;  %s943_s0 = inlined_call_operand.vmem [shape: f32[32,128], index: 0, kind: input, shape index: {}]   ;;  %s944_s1 = inlined_call_operand.vmem [shape: f32[128,128], index: 1, kind: input, shape index: {}]   ;;  %s945_s2 = inlined_call_operand.vmem [shape: f32[1,128], index: 2, kind: input, shape index: {}]   ;;  %s946_s3 = inlined_call_operand.vmem [shape: f32[32,128], index: 3, kind: output, shape index: {0}]   ;;  %s947_s4 = inlined_call_operand.hbm [shape: s32[1,32], index: 4, kind: output, shape index: {1}]   ;;  %s948_s5 = inlined_call_operand.hbm [shape: f32[1], index: 5, kind: output, shape index: {2}]   ;;  %s949_s6 = inlined_call_operand.hbm [shape: f32[1], index: 6, kind: output, shape index: {3}]  }
   0x1   :  { %13 = vsyncpa [#allocation6], 0  ;;  %v31_v0 = vld [vmem:[%s944_s1] sm:$0xff]  ;;  %v32_v1 = vld [vmem:[%s944_s1 + $0x8] sm:$0xff] }
   0x2   :  { %v33_v2 = vld [vmem:[%s944_s1 + $0x10] sm:$0xff]  ;;  %v630_v3 = vpack.c.bf16 %v32_v1, %v31_v0  ;;  %v34_v4 = vld [vmem:[%s944_s1 + $0x18] sm:$0xff]  ;;  %v35_v6 = vld [vmem:[%s944_s1 + $0x20] sm:$0xff] }
   0x3   :  { %v634_v5 = vpack.c.bf16 %v34_v4, %v33_v2  ;;  %v36_v7 = vld [vmem:[%s944_s1 + $0x28] sm:$0xff]  ;;  %v818_v8 = vld [vmem:[%s943_s0] sm:$0xff] }
   0x4   :  { %631 = vmatprep.subr.bf16.mxu0 %v630_v3  ;;  %663 = vmatprep.subr.bf16.mxu1 %v630_v3 }
   0x5   :  { %633 = vmatpush3.bf16.xpose.msra.mxu0 %v630_v3  ;;  %665 = vmatpush3.bf16.msra.mxu1 %v630_v3 }
   0x6   :  { %635 = vmatprep.subr.bf16.mxu0 %v634_v5  ;;  %667 = vmatprep.subr.bf16.mxu1 %v634_v5 }
   0x7   :  { %586 = vmatprep.mubr.f32.mxu0 %v818_v8 }
   0x8   :  { %14 = vsyncpa [#allocation9], 0  ;;  %v638_v9 = vpack.c.bf16 %v36_v7, %v35_v6  ;;  %v37_v10 = vld [vmem:[%s944_s1 + $0x30] sm:$0xff]  ;;  %v38_v11 = vld [vmem:[%s944_s1 + $0x38] sm:$0xff]  ;;  %v147_v28 = vlaneseq  ;;  %vm399_vm10 = vcmask 130112   ;;  %vm406_vm13 = vcmask 195712  }
   0x9   :  { %669 = vmatpush3.bf16.msra.mxu1 %v634_v5  ;;  %v642_v12 = vpack.c.bf16 %v38_v11, %v37_v10  ;;  %v39_v13 = vld [vmem:[%s944_s1 + $0x40] sm:$0xff]  ;;  %v40_v14 = vld [vmem:[%s944_s1 + $0x48] sm:$0xff]  ;;  %v41_v16 = vld [vmem:[%s944_s1 + $0x50] sm:$0xff]  ;;  %vm413_vm14 = vcmask 261312  }
   0xa   :  { %671 = vmatprep.subr.bf16.mxu1 %v638_v9  ;;  %v646_v15 = vpack.c.bf16 %v40_v14, %v39_v13  ;;  %v42_v17 = vld [vmem:[%s944_s1 + $0x58] sm:$0xff]  ;;  %v43_v19 = vld [vmem:[%s944_s1 + $0x60] sm:$0xff]  ;;  %v44_v20 = vld [vmem:[%s944_s1 + $0x68] sm:$0xff]  ;;  %v870_v29 = vand.u32 127, %v147_v28 }
   0xb   :  { %v650_v18 = vpack.c.bf16 %v42_v17, %v41_v16  ;;  %v654_v21 = vpack.c.bf16 %v44_v20, %v43_v19  ;;  %v45_v22 = vld [vmem:[%s944_s1 + $0x70] sm:$0xff]  ;;  %v46_v23 = vld [vmem:[%s944_s1 + $0x78] sm:$0xff]  ;;  %v854_v25 = vld [vmem:[%s943_s0 + $0x8] sm:$0xff]  ;;  %v757_v16 = vmov 0.0  }
   0xc   :  { %v658_v24 = vpack.c.bf16 %v46_v23, %v45_v22  ;;  %v859_v26 = vld [vmem:[%s943_s0 + $0x10] sm:$0xff]  ;;  %v866_v27 = vld [vmem:[%s943_s0 + $0x18] sm:$0xff]  ;;  %v505_v32 = vld [vmem:[%s945_s2] ss:$0 sm:$0xff]  ;;  %vm149_vm0 = vcmp.lt.s32.totalorder %v870_v29, 64 }
   0xd   :  { %637 = vmatpush3.bf16.xpose.msra.mxu0 %v634_v5  ;;  %673 = vmatpush3.bf16.msra.mxu1 %v638_v9  ;;  %25 = vst [vmem:[#allocation2] sm:$0x1] %v757_v16  ;;  %26 = vst [vmem:[#allocation3] sm:$0x1] %v757_v16 }
   0xe   :  { %639 = vmatprep.subr.bf16.mxu0 %v638_v9  ;;  %675 = vmatprep.subr.bf16.mxu1 %v642_v12 }
  0x11   :  { %677 = vmatpush3.bf16.msra.mxu1 %v642_v12 }
  0x12   :  { %679 = vmatprep.subr.bf16.mxu1 %v646_v15 }
  0x15   :  { %641 = vmatpush3.bf16.xpose.msra.mxu0 %v638_v9  ;;  %681 = vmatpush3.bf16.msra.mxu1 %v646_v15 }
  0x16   :  { %643 = vmatprep.subr.bf16.mxu0 %v642_v12  ;;  %683 = vmatprep.subr.bf16.mxu1 %v650_v18 }
  0x19   :  { %685 = vmatpush3.bf16.msra.mxu1 %v650_v18 }
  0x1a   :  { %687 = vmatprep.subr.bf16.mxu1 %v654_v21 }
  0x1d   :  { %645 = vmatpush3.bf16.xpose.msra.mxu0 %v642_v12  ;;  %689 = vmatpush3.bf16.msra.mxu1 %v654_v21 }
  0x1e   :  { %647 = vmatprep.subr.bf16.mxu0 %v646_v15  ;;  %691 = vmatprep.subr.bf16.mxu1 %v658_v24 }
  0x21   :  { %693 = vmatpush3.bf16.msra.mxu1 %v658_v24 }
  0x25   :  { %649 = vmatpush3.bf16.xpose.msra.mxu0 %v646_v15 }
  0x26   :  { %651 = vmatprep.subr.bf16.mxu0 %v650_v18 }
  0x2d   :  { %653 = vmatpush3.bf16.xpose.msra.mxu0 %v650_v18 }
  0x2e   :  { %655 = vmatprep.subr.bf16.mxu0 %v654_v21 }
  0x35   :  { %657 = vmatpush3.bf16.xpose.msra.mxu0 %v654_v21  ;;  %v391_v21 = vshrl.u32 %v147_v28, 7 }
  0x36   :  { %659 = vmatprep.subr.bf16.mxu0 %v658_v24 }
  0x3d   :  { %661 = vmatpush3.bf16.xpose.msra.mxu0 %v658_v24  ;;  %v394_v24 = vadd.s32 4294967288, %v870_v29 }
  0x44   :  { %587 = vmatmul.mubr.f32.vlgmr.msra.gmra.mrb[0].mxu0 %v854_v25 }
  0x45   :  { %589 = vmatprep.mubr.f32.mxu0 %v859_v26 }
  0x48   :  { %590 = vmatmul.mubr.f32.gmra.mrb[2].mxu0 %v866_v27 }
 0x117   :  { %v588_v30 = vpop.f32.mrb[0].mxu0 }
 0x118   :  { %v113_v31 = vpop.f32.mrb[1].mxu0  ;;  %v134_v33 = vmul.f32 2.0, %v588_v30  ;;  %v401_v30 = vadd.s32 4294967280, %v870_v29 }
 0x119   :  { %v133_v34 = vmul.f32 2.0, %v113_v31 }
 0x11a   :  { %v144_v41 = vsub.f32 %v505_v32, %v134_v33  ;;  %v404_v28 = vsub.s32 %v401_v30, %v391_v21 }
 0x11b   :  { %v591_v35 = vpop.f32.mrb[2].mxu0  ;;  %v143_v36 = vsub.f32 %v505_v32, %v133_v34 }
 0x11c   :  { %v123_v37 = vpop.f32.mrb[3].mxu0  ;;  %v136_v38 = vmul.f32 2.0, %v591_v35  ;;  %v151_v43 = vsel %vm149_vm0, %v144_v41, 1e+30 }
 0x11d   :  { %v135_v39 = vmul.f32 2.0, %v123_v37  ;;  %v150_v40 = vsel %vm149_vm0, %v143_v36, 1e+30  ;;  %v392_v37 = vsub.s32 %v870_v29, %v391_v21 }
 0x11e   :  { %154 = vmin.xlane.f32.xlu0 %v150_v40  ;;  %v146_v45 = vsub.f32 %v505_v32, %v136_v38  ;;  %v408_v38 = vadd.s32 4294967272, %v870_v29 }
 0x11f   :  { %v145_v42 = vsub.f32 %v505_v32, %v135_v39 }
 0x120   :  { %v153_v46 = vsel %vm149_vm0, %v146_v45, 1e+30 }
 0x121   :  { %v152_v44 = vsel %vm149_vm0, %v145_v42, 1e+30  ;;  %v758_v42 = vmov 1.0   ;;  %vm415_vm0 = vcmask 253952  }
 0x122   :  { %156 = vmin.xlane.f32.xlu0 %v151_v43  ;;  %158 = vmin.xlane.f32.xlu1 %v152_v44 }
 0x126   :  { %160 = vmin.xlane.f32.xlu1 %v153_v46 }
 0x1ab   :  { %v155_v47 = vpop.xlane.xlu0 %154 }
 0x1ac   :  { %vm162_vm1 = vcmp.le.f32.partialorder %v150_v40, %v155_v47  ;;  %v397_v40 = vsub.s32 %v394_v24, %v391_v21 }
 0x1ad   :  { %v166_v48 = vsel %vm162_vm1, %v870_v29, 128  ;;  %vm421_vm1 = vcmask 1040384  }
 0x1ae   :  { %v171_v49 = vshra.s32 %v166_v48, 16  ;;  %v170_v63 = vand.u32 65535, %v166_v48 }
 0x1af   :  { %v157_v50 = vpop.xlane.xlu0 %156  ;;  %v159_v51 = vpop.xlane.xlu1 %158 }
 0x1b0   :  { %vm163_vm2 = vcmp.le.f32.partialorder %v151_v43, %v157_v50  ;;  %vm164_vm3 = vcmp.le.f32.partialorder %v152_v44, %v159_v51  ;;  %v173_v52 = vcvt.s32.f32 %v171_v49  ;;  %v172_v3 = vcvt.s32.f32 %v170_v63 }
 0x1b1   :  { %v167_v53 = vsel %vm163_vm2, %v870_v29, 128  ;;  %v168_v54 = vsel %vm164_vm3, %v870_v29, 128 }
 0x1b2   :  { %174 = vmin.xlane.f32.xlu0 %v173_v52  ;;  %v185_v55 = vshra.s32 %v167_v53, 16  ;;  %v199_v56 = vshra.s32 %v168_v54, 16  ;;  %v184_v0 = vand.u32 65535, %v167_v53  ;;  %v198_v1 = vand.u32 65535, %v168_v54 }
 0x1b3   :  { %v161_v57 = vpop.xlane.xlu1 %160 }
 0x1b4   :  { %vm165_vm4 = vcmp.le.f32.partialorder %v153_v46, %v161_v57  ;;  %v187_v58 = vcvt.s32.f32 %v185_v55  ;;  %v201_v59 = vcvt.s32.f32 %v199_v56  ;;  %v200_v9 = vcvt.s32.f32 %v198_v1 }
 0x1b5   :  { %v169_v60 = vsel %vm165_vm4, %v870_v29, 128  ;;  %v186_v10 = vcvt.s32.f32 %v184_v0  ;;  %v411_v46 = vsub.s32 %v408_v38, %v391_v21  ;;  %v354_v38 = vld [vmem:[#allocation3] sm:$0x1] }
 0x1b6   :  { %188 = vmin.xlane.f32.xlu1 %v187_v58  ;;  %202 = vmin.xlane.f32.xlu0 %v201_v59  ;;  %v213_v61 = vshra.s32 %v169_v60, 16  ;;  %v212_v5 = vand.u32 65535, %v169_v60 }
 0x1b8   :  { %v215_v62 = vcvt.s32.f32 %v213_v61  ;;  %v214_v14 = vcvt.s32.f32 %v212_v5  ;;  %v370_v5 = vld [vmem:[#allocation2] sm:$0x1] }
 0x1ba   :  { %216 = vmin.xlane.f32.xlu1 %v215_v62 }
 0x23f   :  { %v175_v2 = vpop.xlane.xlu0 %174 }
 0x240   :  { %vm176_vm5 = vcmp.eq.f32.partialorder %v173_v52, %v175_v2  ;;  %v181_v17 = vcvt.f32.s32 %v175_v2 }
 0x241   :  { %v177_v4 = vsel %vm176_vm5, %v172_v3, inf }
 0x242   :  { %178 = vmin.xlane.f32.xlu0 %v177_v4  ;;  %v182_v22 = vshll.u32 %v181_v17, 16 }
 0x243   :  { %v203_v6 = vpop.xlane.xlu0 %202  ;;  %v189_v7 = vpop.xlane.xlu1 %188 }
 0x244   :  { %vm204_vm6 = vcmp.eq.f32.partialorder %v201_v59, %v203_v6  ;;  %vm190_vm7 = vcmp.eq.f32.partialorder %v187_v58, %v189_v7  ;;  %v209_v18 = vcvt.f32.s32 %v203_v6  ;;  %v195_v19 = vcvt.f32.s32 %v189_v7 }
 0x245   :  { %v205_v11 = vsel %vm204_vm6, %v200_v9, inf  ;;  %v191_v12 = vsel %vm190_vm7, %v186_v10, inf }
 0x246   :  { %206 = vmin.xlane.f32.xlu0 %v205_v11  ;;  %192 = vmin.xlane.f32.xlu1 %v191_v12  ;;  %v210_v31 = vshll.u32 %v209_v18, 16  ;;  %v196_v33 = vshll.u32 %v195_v19, 16 }
 0x247   :  { %v217_v13 = vpop.xlane.xlu1 %216 }
 0x248   :  { %vm218_vm8 = vcmp.eq.f32.partialorder %v215_v62, %v217_v13  ;;  %v223_v34 = vcvt.f32.s32 %v217_v13 }
 0x249   :  { %v219_v15 = vsel %vm218_vm8, %v214_v14, inf }
 0x24a   :  { %220 = vmin.xlane.f32.xlu1 %v219_v15  ;;  %v224_v45 = vshll.u32 %v223_v34, 16 }
 0x2cf   :  { %v179_v20 = vpop.xlane.xlu0 %178 }
 0x2d0   :  { %v180_v23 = vcvt.f32.s32 %v179_v20 }
 0x2d2   :  { %v183_v32 = vadd.s32 %v182_v22, %v180_v23 }
 0x2d3   :  { %v207_v35 = vpop.xlane.xlu0 %206  ;;  %v193_v36 = vpop.xlane.xlu1 %192 }
 0x2d4   :  { %v208_v39 = vcvt.f32.s32 %v207_v35  ;;  %v194_v41 = vcvt.f32.s32 %v193_v36  ;;  %vm226_vm9 = vcmp.eq.s32.totalorder %v870_v29, %v183_v32  ;;  %v393_v49 = vrot.slane %v183_v32, %v392_v37 }
 0x2d5   :  { %624 = vmatprep.mubr.msk.f32.mxu1 %vm226_vm9, %v758_v42  ;;  %v506_v52 = vsel %vm226_vm9, 1.0, %v757_v16 }
 0x2d6   :  { %v211_v43 = vadd.s32 %v210_v31, %v208_v39  ;;  %v197_v44 = vadd.s32 %v196_v33, %v194_v41 }
 0x2d7   :  { %v221_v47 = vpop.xlane.xlu1 %220 }
 0x2d8   :  { %v398_v48 = vrot.slane %v197_v44, %v397_v40  ;;  %vm227_vm11 = vcmp.eq.s32.totalorder %v870_v29, %v197_v44  ;;  %v222_v50 = vcvt.f32.s32 %v221_v47  ;;  %v405_v51 = vrot.slane %v211_v43, %v404_v28 }
 0x2d9   :  { %v507_v53 = vsel %vm227_vm11, 1.0, %v757_v16  ;;  %625 = vmatmul.mubr.msk.f32.vlgmr.msra.gmra.mrb[0].mxu1 %vm227_vm11, %v758_v42  ;;  %vm228_vm12 = vcmp.eq.s32.totalorder %v870_v29, %v211_v43 }
 0x2da   :  { %v375_v54 = vadd.f32 %v507_v53, %v506_v52  ;;  %v225_v55 = vadd.s32 %v224_v45, %v222_v50  ;;  %627 = vmatprep.mubr.msk.f32.mxu1 %vm228_vm12, %v758_v42  ;;  %v400_v56 = vsel %vm399_vm10, %v398_v48, %v393_v49  ;;  %v508_v57 = vsel %vm228_vm12, 1.0, %v757_v16 }
 0x2db   :  { %v407_v61 = vsel %vm406_vm13, %v405_v51, %v400_v56 }
 0x2dc   :  { %v412_v58 = vrot.slane %v225_v55, %v411_v46  ;;  %v376_v59 = vadd.f32 %v508_v57, %v375_v54  ;;  %vm229_vm15 = vcmp.eq.s32.totalorder %v870_v29, %v225_v55 }
 0x2dd   :  { %v509_v60 = vsel %vm229_vm15, 1.0, %v757_v16  ;;  %628 = vmatmul.mubr.msk.f32.gmra.mrb[2].mxu1 %vm229_vm15, %v758_v42 }
 0x2de   :  { %v377_v62 = vadd.f32 %v509_v60, %v376_v59  ;;  %v414_v63 = vsel %vm413_vm14, %v412_v58, %v407_v61 }
 0x2df   :  { %416 = vst.msk [vmem:[#allocation4] sm:$0x1] %vm415_vm0, %v414_v63 }
 0x2e0   :  { %v378_v0 = vrot.slane %v377_v62, 4 }
 0x2e2   :  { %v379_v1 = vadd.f32 %v378_v0, %v377_v62 }
 0x2e4   :  { %v380_v2 = vrot.slane %v379_v1, 2 }
 0x2e6   :  { %v381_v3 = vadd.f32 %v380_v2, %v379_v1 }
 0x2e8   :  { %v382_v4 = vrot.slane %v381_v3, 1 }
 0x2ea   :  { %v383_v6 = vadd.f32 %v382_v4, %v381_v3 }
 0x2ec   :  { %v384_v7 = vadd.f32 %v383_v6, %v370_v5 }
 0x2ee   :  { %385 = vst [vmem:[#allocation2] sm:$0x1] %v384_v7 }
 0x2f5   :  { %v438_v9 = vld [vmem:[#allocation2] sm:$0x1] }
 0x2f6   :  { %v440_v10 = vmul.f32 0.03125, %v438_v9 }
 0x2f8   :  { %v441_v11 = vadd.f32 1e-10, %v440_v10 }
 0x2fa   :  { %705 = vlog2.f32 %v441_v11 }
 0x304   :  { %v706_v29 = vpop.eup %705 }
 0x305   :  { %v443_v12 = vmul.f32 0.6931472, %v706_v29 }
 0x307   :  { %v444_v13 = vmul.f32 %v443_v12, %v440_v10 }
 0x309   :  { %v445_v14 = vsel %vm421_vm1, %v444_v13, 0.0 }
 0x30a   :  { %446 = vadd.xlane.f32.xlu1 %v445_v14 }
 0x397   :  { %v447_v41 = vpop.xlane.xlu1 %446 }
 0x398   :  { %v448_v28 = vrot.slane %v447_v41, 4 }
 0x39a   :  { %v449_v42 = vadd.f32 %v448_v28, %v447_v41 }
 0x39c   :  { %v450_v43 = vrot.slane %v449_v42, 2 }
 0x3ac   :  { %v626_v15 = vpop.f32.mrb[0].mxu1 }
 0x3ad   :  { %v347_v16 = vsub.f32 %v626_v15, %v854_v25  ;;  %387 = vst [vmem:[%s946_s3 + $0x8] sm:$0xff] %v626_v15  ;;  %v327_v17 = vpop.f32.mrb[1].mxu1 }
 0x3ae   :  { %v346_v18 = vsub.f32 %v327_v17, %v818_v8  ;;  %386 = vst [vmem:[%s946_s3] sm:$0xff] %v327_v17 }
 0x3af   :  { %v356_v19 = vmul.f32 %v347_v16, %v347_v16 }
 0x3b0   :  { %v355_v20 = vmul.f32 %v346_v18, %v346_v18  ;;  %v629_v21 = vpop.f32.mrb[2].mxu1 }
 0x3b1   :  { %389 = vst [vmem:[%s946_s3 + $0x18] sm:$0xff] %v629_v21  ;;  %v337_v22 = vpop.f32.mrb[3].mxu1  ;;  %v349_v23 = vsub.f32 %v629_v21, %v866_v27 }
 0x3b2   :  { %v359_v25 = vadd.f32 %v356_v19, %v355_v20  ;;  %v348_v24 = vsub.f32 %v337_v22, %v859_v26  ;;  %388 = vst [vmem:[%s946_s3 + $0x10] sm:$0xff] %v337_v22  ;;  %s759_s3 = smov [#allocation4]  }
 0x3b3   :  { %v358_v30 = vmul.f32 %v349_v23, %v349_v23  ;;  %s470_s20 = sshll.u32 %s759_s3, 4  ;;  %s471_s20 = int_to_ptr.vmem [resolvable:$true] %s470_s20 }
 0x3b4   :  { %v357_v8 = vmul.f32 %v348_v24, %v348_v24  ;;  %s709_s21 = scalar_lea.vmem %s471_s20, 16  ;;  %s713_s22 = scalar_lea.vmem %s471_s20, 32 }
 0x3b5   :  { %p710_p0 = scmp.ne.s32.totalorder %s471_s20, %s709_s21  ;;  %p714_p1 = scmp.lt.s32.totalorder %s471_s20, %s471_s20 }
 0x3b6   :  { %v360_v31 = vadd.f32 %v359_v25, %v357_v8  ;;  %p715_p2 = scmp.lt.s32.totalorder %s713_s22, %s709_s21 }
 0x3b8   :  { %v361_v32 = vadd.f32 %v360_v31, %v358_v30  ;;  %p716_p3 = por %p715_p2, %p714_p1 }
 0x3ba   :  { %v362_v33 = vrot.slane %v361_v32, 4  ;;  %p717_p4 = pnand %p716_p3, %p710_p0 }
 0x3bc   :  { %v363_v34 = vadd.f32 %v362_v33, %v361_v32 }
 0x3be   :  { %v364_v35 = vrot.slane %v363_v34, 2 }
 0x3c0   :  { %v365_v36 = vadd.f32 %v364_v35, %v363_v34 }
 0x3c2   :  { %v366_v37 = vrot.slane %v365_v36, 1 }
 0x3c4   :  { %v367_v39 = vadd.f32 %v366_v37, %v365_v36 }
 0x3c6   :  { %v368_v40 = vadd.f32 %v367_v39, %v354_v38 }
 0x3c8   :  { %369 = vst [vmem:[#allocation3] sm:$0x1] %v368_v40 }
 0x3cf   :  { %v420_v27 = vld [vmem:[#allocation3] sm:$0x1] }
 0x3d0   :  { %v422_v26 = vsel %vm421_vm1, %v420_v27, 0.0 }
 0x3d1   :  { %423 = vadd.xlane.f32.xlu0 %v422_v26 }
 0x45e   :  { %v424_v44 = vpop.xlane.xlu0 %423 }
 0x45f   :  { %v425_v45 = vrot.slane %v424_v44, 4 }
 0x461   :  { %v426_v46 = vadd.f32 %v425_v45, %v424_v44 }
 0x462   :  { %720 = shalt.err (!%p717_p4)
}
 0x463   :  { %s721_s25 = scalar_lea.hbm %s947_s4, 16 }
 0x464   :  { %p722_p5 = scmp.ne.s32.totalorder %s947_s4, %s721_s25  ;;  %p725_p6 = scmp.lt.u32.totalorder %s721_s25, %s947_s4 }
 0x466   :  { %p727_p7 = pnand %p725_p6, %p722_p5 }
 0x468   :  { %730 = shalt.err (!%p727_p7)
}
 0x469   :  { %473 = dma.vmem_to_hbm [thread:$0]  %s471_s20, 16, %s947_s4, [#allocation5]   ;;  %v451_v47 = vadd.f32 %v450_v43, %v449_v42  ;;  %v427_v48 = vrot.slane %v426_v46, 2 }
 0x46a   :  { %s731_s4 = scalar_lea.hbm %s948_s5, 16 }
 0x46b   :  { %v428_v49 = vadd.f32 %v427_v48, %v426_v46  ;;  %v452_v50 = vrot.slane %v451_v47, 1  ;;  %p732_p8 = scmp.ne.s32.totalorder %s948_s5, %s731_s4  ;;  %p735_p9 = scmp.lt.u32.totalorder %s731_s4, %s948_s5 }
 0x46d   :  { %v429_v51 = vrot.slane %v428_v49, 1  ;;  %v453_v53 = vadd.f32 %v452_v50, %v451_v47  ;;  %p737_p10 = pnand %p735_p9, %p732_p8 }
 0x46f   :  { %v430_v52 = vadd.f32 %v429_v51, %v428_v49 }
 0x471   :  { %694 = vpush %v430_v52 }
 0x472   :  { %696 = vpush %v453_v53 }
 0x4a2   :  { %s695_s8 = spop %694 }
 0x4a3   :  { %s432_s1 = smul.f32 1.25, %s695_s8  ;;  %s697_s9 = spop %696 }
 0x4a4   :  { %s455_s10 = ssub.f32 0.0, %s697_s9 }
 0x4a5   :  { %s435_s11 = smul.f32 0.001953125, %s432_s1 }
 0x4a6   :  { %v456_v54 = vstv %s455_s10 }
 0x4a7   :  { %v457_v55 = vmul.f32 1.442695, %v456_v54  ;;  %437 = sst [smem:[#allocation7]] %s435_s11 }
 0x4a8   :  { %740 = shalt.err (!%p737_p10)
}
 0x4a9   :  { %s760_s16 = smov [#allocation7]   ;;  %707 = vpow2.f32 %v457_v55  ;;  %s741_s21 = scalar_lea.hbm %s949_s6, 16 }
 0x4aa   :  { %481 = dma.smem_to_hbm %s760_s16, 16, %s948_s5, [#allocation6]  }
 0x4ab   :  { %p742_p11 = scmp.ne.s32.totalorder %s949_s6, %s741_s21  ;;  %p745_p12 = scmp.lt.u32.totalorder %s741_s21, %s949_s6 }
 0x4ad   :  { %p747_p13 = pnand %p745_p12, %p742_p11 }
 0x4b3   :  { %v708_v56 = vpop.eup %707 }
 0x4b4   :  { %698 = vpush %v708_v56 }
 0x4e5   :  { %s699_s19 = spop %698 }
 0x4e6   :  { %461 = sst [smem:[#allocation8]] %s699_s19 }
 0x4e7   :  { %750 = shalt.err (!%p747_p13)
}
 0x4e8   :  { %s761_s5 = smov [#allocation8]  }
 0x4e9   :  { %489 = dma.smem_to_hbm %s761_s5, 16, %s949_s6, [#allocation9]  }
 0x4ea   :  { %751 = dma.done.wait [#allocation5], 16  }
 0x4eb   :  { %752 = vsyncadd [#allocation5], 4294967280 }
 0x4ec   :  { %753 = dma.done.wait [#allocation6], 16  }
 0x4ed   :  { %754 = vsyncadd [#allocation6], 4294967280 }
 0x4ee   :  { %755 = dma.done.wait [#allocation9], 16  }
 0x4ef   :  { %756 = vsyncadd [#allocation9], 4294967280 }
 0x4f0   :  { %501 = sfence }
 0x4f1   :  { %502 = vsyncpa [#allocation5], 1 }
 0x4f2   :  { %503 = vsyncpa [#allocation6], 1 }
 0x4f3   :  { %504 = vsyncpa [#allocation9], 1 }

// kernel: vqvae_forward.19
= control target key start
LH: loop header
LB: loop body
LE: loop exit
PB: predicated region body
PF: predicated region fallthrough
CT: control target
= control target key end

     0   :  { %s711_s12 = smov 0   ;;  %s713_s13 = smov 0   ;;  %s799_s0 = inlined_call_operand.vmem [shape: bf16[1,32,256], index: 0, kind: input, shape index: {}]   ;;  %s800_s1 = inlined_call_operand.vmem [shape: bf16[1,256,128], index: 1, kind: input, shape index: {}]   ;;  %s801_s2 = inlined_call_operand.vmem [shape: f32[1,1,128], index: 2, kind: input, shape index: {}]   ;;  %s802_s3 = inlined_call_operand.vmem [shape: bf16[1,32,32], index: 3, kind: output, shape index: {}]  }
   0x1   :  { %s715_s14 = smov 0  }
   0x2 LB: > { %s22_s15 = sadd.s32 1, %s685_s13  ;;  %p570_p0 = scmp.ge.s32.totalorder %s689_s14, 1  ;;  %s689_s14 = sphi %s715_s14, %s13_s14   ;;  %s685_s13 = sphi %s713_s13, %s804_s13   ;;  %s681_s12 = sphi %s711_s12, %s803_s12  }
   0x3   : > { %p23_p1 = scmp.ge.s32.totalorder %s22_s15, 2  ;;  %p177_p2 = scmp.lt.s32.totalorder %s689_s14, 3 }
   0x5   : > { %s806_s15 = smov (%p23_p1, %s22_s15), 0  ;;  %p178_p3 = pnand %p570_p0, %p177_p2 }
   0x6   : > { %v648_v0 = vld [vmem:[%s800_s1 + $0x40] sm:$0xff] (!%p178_p3)   ;;  %s571_s18 = sshll.u32 (!%p178_p3), %s681_s12, 1  ;;  %v650_v2 = vld [vmem:[%s800_s1 + $0x48] sm:$0xff] (!%p178_p3)   ;;  %v652_v4 = vld [vmem:[%s800_s1 + $0x50] sm:$0xff] (!%p178_p3)   ;;  %vm444_vm0 = vcmask (!%p178_p3), 257024  }
   0x7   : > { %181 = sbr.rel (%p178_p3) target bundleno = 261 (0x105), region = 32  ;;  %v649_v1 = vld [vmem:[%s800_s1] sm:$0xff] (!%p178_p3)   ;;  %602 = vmatprep.subr.bf16.mxu0 (!%p178_p3), %v648_v0  ;;  %v651_v3 = vld [vmem:[%s800_s1 + $0x8] sm:$0xff] (!%p178_p3)   ;;  %p221_p4 = scmp.lt.s32.totalorder (!%p178_p3), %s571_s18, 3  ;;  %v653_v5 = vld [vmem:[%s800_s1 + $0x10] sm:$0xff] (!%p178_p3)  }
   0x8   : > { %603 = vmatpush3.bf16.msra.mxu0 (!%p178_p3), %v649_v1  ;;  %v654_v6 = vld [vmem:[%s800_s1 + $0x58] sm:$0xff] (!%p178_p3)   ;;  %v656_v8 = vld [vmem:[%s800_s1 + $0x60] sm:$0xff] (!%p178_p3)   ;;  %v658_v10 = vld [vmem:[%s800_s1 + $0x68] sm:$0xff] (!%p178_p3)  }
   0x9   : > { %604 = vmatprep.subr.bf16.mxu0 (!%p178_p3), %v650_v2  ;;  %v655_v7 = vld [vmem:[%s800_s1 + $0x18] sm:$0xff] (!%p178_p3)   ;;  %v657_v9 = vld [vmem:[%s800_s1 + $0x20] sm:$0xff] (!%p178_p3)   ;;  %v659_v12 = vld [vmem:[%s800_s1 + $0x28] sm:$0xff] (!%p178_p3)  }
   0xa   : > { %v660_v13 = vld [vmem:[%s800_s1 + $0x70] sm:$0xff] (!%p178_p3)   ;;  %v662_v15 = vld [vmem:[%s800_s1 + $0x78] sm:$0xff] (!%p178_p3)   ;;  %v576_v19 = vld [vmem:[%s801_s2] ss:$0 sm:$0xff] (!%p178_p3) }
   0xb   : > { %v661_v14 = vld [vmem:[%s800_s1 + $0x30] sm:$0xff] (!%p178_p3)   ;;  %v663_v16 = vld [vmem:[%s800_s1 + $0x38] sm:$0xff] (!%p178_p3)  }
   0xc   : > { %605 = vmatpush3.bf16.msra.mxu0 (!%p178_p3), %v651_v3 }
   0xd   : > { %606 = vmatprep.subr.bf16.mxu0 (!%p178_p3), %v652_v4 }
   0xe   : > { %s808_s18 = smov (!%p221_p4, %s571_s18), 3 }
   0xf   : > { %s599_s6 = sshll.u32 %s808_s18, 3  ;;  %s575_s5 = sshll.u32 %s808_s18, 2 }
  0x10   : > { %607 = vmatpush3.bf16.msra.mxu0 %v653_v5  ;;  %s227_s11 = scalar_lea.vmem %s799_s0, %s599_s6  ;;  %s245_s8 = scalar_lea.vmem %s802_s3, %s575_s5 }
  0x11   : > { %608 = vmatprep.subr.bf16.mxu0 %v654_v6  ;;  %v666_v11 = vld [vmem:[%s227_s11 + $0x4] ss:$8 sps:$4 sm:$0xff]   ;;  %v664_v17 = vld [vmem:[%s227_s11] ss:$8 sps:$4 sm:$0xff]  }
  0x12   : > { %427 = vmatprep.mubr.bf16.mxu0 %v666_v11 }
  0x14   : > { %609 = vmatpush3.bf16.msra.mxu0 %v655_v7 }
  0x15   : > { %610 = vmatprep.subr.bf16.mxu0 %v656_v8 }
  0x18   : > { %611 = vmatpush3.bf16.msra.mxu0 %v657_v9 }
  0x19   : > { %612 = vmatprep.subr.bf16.mxu0 %v658_v10 }
  0x1c   : > { %613 = vmatpush3.bf16.msra.mxu0 %v659_v12 }
  0x1d   : > { %614 = vmatprep.subr.bf16.mxu0 %v660_v13 }
  0x20   : > { %615 = vmatpush3.bf16.msra.mxu0 %v661_v14 }
  0x21   : > { %616 = vmatprep.subr.bf16.mxu0 %v662_v15 }
  0x24   : > { %617 = vmatpush3.bf16.msra.mxu0 %v663_v16 }
  0x27   : > { %428 = vmatmul.mubr.bf16.vlgmr.msra.gmra.mrb[0].mxu0 %v664_v17 }
  0xfa   : > { %v618_v18 = vpop.f32.mrb[0].mxu0 }
  0xfb   : > { %v619_v20 = vpop.f32.mrb[1].mxu0 }
  0xfc   : > { %v620_v21 = vadd.f32 %v619_v20, %v618_v18  ;;  %v621_v22 = vpop.f32.mrb[2].mxu0 }
  0xfd   : > { %v622_v23 = vpop.f32.mrb[3].mxu0 }
  0xfe   : > { %v430_v24 = vadd.f32 %v620_v21, %v576_v19  ;;  %v623_v25 = vadd.f32 %v622_v23, %v621_v22 }
 0x100   : > { %v600_v26 = vpack.c.bf16 %v430_v24, %v430_v24  ;;  %v433_v27 = vadd.f32 %v623_v25, %v576_v19 }
 0x102   : > { %445 = vst.msk [vmem:[%s245_s8] sm:$0xf] %vm444_vm0, %v600_v26  ;;  %v601_v28 = vpack.c.bf16 %v433_v27, %v433_v27 }
 0x104   : > { %446 = vst.msk [vmem:[%s245_s8 + $0x4] sm:$0xf] %vm444_vm0, %v601_v28 }
 0x105 PF: > { %s13_s14 = sadd.s32 1, %s689_s14   ;;  %s803_s12 = smov %s685_s13 }
 0x106   : > { %p10_p5 = scmp.ge.s32.totalorder %s13_s14, 4   ;;  %s804_s13 = smov %s806_s15 }
 0x108   :  { %12 = sbr.rel (!%p10_p5) target bundleno = 2 (0x2), region = 68 }

// kernel: vqvae_forward.22
= control target key start
LH: loop header
LB: loop body
LE: loop exit
PB: predicated region body
PF: predicated region fallthrough
CT: control target
= control target key end

     0   :  { %s661_s12 = smov 0   ;;  %s663_s13 = smov 0   ;;  %s719_s0 = inlined_call_operand.vmem [shape: bf16[4,32,128], index: 0, kind: input, shape index: {}]   ;;  %s720_s1 = inlined_call_operand.vmem [shape: bf16[4,128,128], index: 1, kind: input, shape index: {}]   ;;  %s721_s2 = inlined_call_operand.vmem [shape: f32[4,1,128], index: 2, kind: input, shape index: {}]   ;;  %s722_s3 = inlined_call_operand.vmem [shape: bf16[4,32,16], index: 3, kind: output, shape index: {}]  }
   0x1   :  { %s665_s14 = smov 0  }
   0x2 LB: > { %s25_s15 = sadd.s32 1, %s634_s13  ;;  %p522_p0 = scmp.ge.s32.totalorder %s638_s14, 1  ;;  %s638_s14 = sphi %s665_s14, %s13_s14   ;;  %s634_s13 = sphi %s663_s13, %s724_s13   ;;  %s630_s12 = sphi %s661_s12, %s723_s12  }
   0x3   : > { %p27_p1 = scmp.ge.s32.totalorder %s25_s15, 4  ;;  %p176_p2 = scmp.lt.s32.totalorder %s638_s14, 5 }
   0x5   : > { %s726_s15 = smov (%p27_p1, %s25_s15), 0  ;;  %p177_p3 = pnand %p522_p0, %p176_p2 }
   0x6   : > { %p217_p4 = scmp.lt.s32.totalorder (!%p177_p3), %s630_s12, 3  ;;  %v640_v6 = vmov (!%p177_p3), 0   ;;  %vm405_vm0 = vcmask (!%p177_p3), 125952  }
   0x7   : > { %180 = sbr.rel (%p177_p3) target bundleno = 272 (0x110), region = 32 }
   0xe   : > { %s728_s12 = smov (!%p217_p4, %s630_s12), 3 }
   0xf   : > { %s547_s16 = sshll.u32 %s728_s12, 6  ;;  %s546_s20 = sshll.u32 %s728_s12, 4 }
  0x10   : > { %s685_s19 = scalar_lea.vmem %s720_s1, %s547_s16  ;;  %s224_s23 = scalar_lea.vmem %s719_s0, %s546_s20 }
  0x11   : > { %v608_v0 = vld [vmem:[%s685_s19] sm:$0xff]   ;;  %v609_v1 = vld [vmem:[%s685_s19 + $0x8] sm:$0xff]   ;;  %v610_v2 = vld [vmem:[%s685_s19 + $0x10] sm:$0xff]   ;;  %s233_s26 = scalar_lea.vmem %s721_s2, %s728_s12  ;;  %s242_s29 = scalar_lea.vmem %s722_s3, %s546_s20 }
  0x12   : > { %563 = vmatprep.subr.bf16.mxu0 %v608_v0  ;;  %v611_v3 = vld [vmem:[%s685_s19 + $0x18] sm:$0xff]   ;;  %v245_v4 = vld [vmem:[%s224_s23] sm:$0xf]  ;;  %v246_v5 = vld [vmem:[%s224_s23 + $0x4] sm:$0xf] }
  0x13   : > { %564 = vmatpush3.bf16.msra.mxu0 %v608_v0  ;;  %v249_v7 = vmax.bf16 %v640_v6, %v245_v4  ;;  %v250_v8 = vmax.bf16 %v640_v6, %v246_v5  ;;  %v612_v10 = vld [vmem:[%s685_s19 + $0x20] sm:$0xff]   ;;  %v613_v11 = vld [vmem:[%s685_s19 + $0x28] sm:$0xff]   ;;  %v614_v12 = vld [vmem:[%s685_s19 + $0x30] sm:$0xff]  }
  0x14   : > { %565 = vmatprep.subr.bf16.mxu0 %v609_v1  ;;  %v247_v13 = vld [vmem:[%s224_s23 + $0x8] sm:$0xf]  ;;  %v248_v14 = vld [vmem:[%s224_s23 + $0xc] sm:$0xf]  ;;  %v615_v15 = vld [vmem:[%s685_s19 + $0x38] sm:$0xff]  }
  0x15   : > { %v530_v9 = vcombine.low %v249_v7, %v250_v8  ;;  %v251_v16 = vmax.bf16 %v640_v6, %v247_v13  ;;  %v252_v17 = vmax.bf16 %v640_v6, %v248_v14  ;;  %v529_v19 = vld [vmem:[%s233_s26] ss:$0 sm:$0xff] }
  0x17   : > { %566 = vmatpush3.bf16.msra.mxu0 %v609_v1  ;;  %579 = vmatprep.mubr.bf16.mxu0 %v530_v9  ;;  %v531_v18 = vcombine.low %v251_v16, %v252_v17 }
  0x18   : > { %567 = vmatprep.subr.bf16.mxu0 %v610_v2 }
  0x1b   : > { %568 = vmatpush3.bf16.msra.mxu0 %v610_v2 }
  0x1c   : > { %569 = vmatprep.subr.bf16.mxu0 %v611_v3 }
  0x1f   : > { %570 = vmatpush3.bf16.msra.mxu0 %v611_v3 }
  0x20   : > { %571 = vmatprep.subr.bf16.mxu0 %v612_v10 }
  0x23   : > { %572 = vmatpush3.bf16.msra.mxu0 %v612_v10 }
  0x24   : > { %573 = vmatprep.subr.bf16.mxu0 %v613_v11 }
  0x27   : > { %574 = vmatpush3.bf16.msra.mxu0 %v613_v11 }
  0x28   : > { %575 = vmatprep.subr.bf16.mxu0 %v614_v12 }
  0x2b   : > { %576 = vmatpush3.bf16.msra.mxu0 %v614_v12 }
  0x2c   : > { %577 = vmatprep.subr.bf16.mxu0 %v615_v15 }
  0x2f   : > { %578 = vmatpush3.bf16.msra.mxu0 %v615_v15 }
  0x32   : > { %580 = vmatmul.mubr.bf16.vlgmr.msra.gmra.mrb[0].mxu0 %v531_v18 }
 0x105   : > { %v581_v20 = vpop.f32.mrb[0].mxu0 }
 0x106   : > { %v379_v21 = vadd.f32 %v581_v20, %v529_v19  ;;  %v370_v22 = vpop.f32.mrb[1].mxu0 }
 0x107   : > { %v371_v23 = vadd.f32 %v529_v19, %v370_v22  ;;  %v582_v24 = vpop.f32.mrb[2].mxu0 }
 0x108   : > { %v387_v25 = vmax.f32 %v379_v21, 0.0  ;;  %v382_v26 = vadd.f32 %v582_v24, %v529_v19  ;;  %v373_v27 = vpop.f32.mrb[3].mxu0 }
 0x109   : > { %v385_v28 = vmax.f32 %v371_v23, 0.0  ;;  %v374_v29 = vadd.f32 %v529_v19, %v373_v27 }
 0x10a   : > { %v551_v30 = vpack.c.bf16 %v387_v25, %v387_v25  ;;  %v388_v31 = vmax.f32 %v382_v26, 0.0 }
 0x10b   : > { %v549_v32 = vpack.c.bf16 %v385_v28, %v385_v28  ;;  %v386_v33 = vmax.f32 %v374_v29, 0.0 }
 0x10c   : > { %408 = vst.msk [vmem:[%s242_s29 + $0x8] sm:$0xf] %vm405_vm0, %v551_v30  ;;  %v552_v34 = vpack.c.bf16 %v388_v31, %v388_v31 }
 0x10d   : > { %406 = vst.msk [vmem:[%s242_s29] sm:$0xf] %vm405_vm0, %v549_v32  ;;  %v550_v35 = vpack.c.bf16 %v386_v33, %v386_v33 }
 0x10e   : > { %409 = vst.msk [vmem:[%s242_s29 + $0xc] sm:$0xf] %vm405_vm0, %v552_v34 }
 0x10f   : > { %407 = vst.msk [vmem:[%s242_s29 + $0x4] sm:$0xf] %vm405_vm0, %v550_v35 }
 0x110 PF: > { %s13_s14 = sadd.s32 1, %s638_s14   ;;  %s723_s12 = smov %s634_s13 }
 0x111   : > { %p10_p5 = scmp.ge.s32.totalorder %s13_s14, 6   ;;  %s724_s13 = smov %s726_s15 }
 0x113   :  { %12 = sbr.rel (!%p10_p5) target bundleno = 2 (0x2), region = 68 }

// kernel: vqvae_forward.23
= control target key start
LH: loop header
LB: loop body
LE: loop exit
PB: predicated region body
PF: predicated region fallthrough
CT: control target
= control target key end

     0   :  { %s783_s12 = smov 0   ;;  %s785_s13 = smov 0   ;;  %s881_s0 = inlined_call_operand.vmem [shape: bf16[4,128,128], index: 0, kind: input, shape index: {}]   ;;  %s882_s1 = inlined_call_operand.vmem [shape: bf16[4,128,128], index: 1, kind: input, shape index: {}]   ;;  %s883_s2 = inlined_call_operand.vmem [shape: f32[4,1,128], index: 2, kind: input, shape index: {}]   ;;  %s884_s3 = inlined_call_operand.vmem [shape: f32[4,128,1], index: 3, kind: output, shape index: {}]  }
   0x1   :  { %s787_s14 = smov 0  }
   0x2 LB: > { %s25_s15 = sadd.s32 1, %s757_s13  ;;  %p606_p0 = scmp.ge.s32.totalorder %s761_s14, 1  ;;  %s761_s14 = sphi %s787_s14, %s13_s14   ;;  %s757_s13 = sphi %s785_s13, %s886_s13   ;;  %s753_s12 = sphi %s783_s12, %s885_s12  }
   0x3   : > { %p27_p1 = scmp.ge.s32.totalorder %s25_s15, 4  ;;  %p176_p2 = scmp.lt.s32.totalorder %s761_s14, 5 }
   0x5   : > { %s888_s15 = smov (%p27_p1, %s25_s15), 0  ;;  %p177_p3 = pnand %p606_p0, %p176_p2 }
   0x6   : > { %p217_p4 = scmp.lt.s32.totalorder (!%p177_p3), %s753_s12, 3  ;;  %vm477_vm0 = vcmask (!%p177_p3), 7168  }
   0x7   : > { %180 = sbr.rel (%p177_p3) target bundleno = 276 (0x114), region = 32 }
   0xe   : > { %s890_s12 = smov (!%p217_p4, %s753_s12), 3 }
   0xf   : > { %s632_s16 = sshll.u32 %s890_s12, 6  ;;  %s233_s25 = scalar_lea.vmem %s883_s2, %s890_s12 }
  0x10   : > { %s807_s19 = scalar_lea.vmem %s882_s1, %s632_s16  ;;  %s815_s22 = scalar_lea.vmem %s881_s0, %s632_s16  ;;  %v613_v16 = vld [vmem:[%s233_s25] ss:$0 sm:$0xff] }
  0x11   : > { %v723_v0 = vld [vmem:[%s807_s19] sm:$0xff]   ;;  %v724_v1 = vld [vmem:[%s807_s19 + $0x8] sm:$0xff]   ;;  %v725_v2 = vld [vmem:[%s807_s19 + $0x10] sm:$0xff]   ;;  %s634_s26 = sshll.u32 %s890_s12, 7 }
  0x12   : > { %651 = vmatprep.subr.bf16.mxu0 %v723_v0  ;;  %683 = vmatprep.subr.bf16.mxu1 %v723_v0  ;;  %v726_v3 = vld [vmem:[%s807_s19 + $0x18] sm:$0xff]   ;;  %v731_v4 = vld [vmem:[%s815_s22] sm:$0xff]   ;;  %v728_v7 = vld [vmem:[%s807_s19 + $0x28] sm:$0xff]   ;;  %s838_s29 = scalar_lea.vmem %s884_s3, %s634_s26 }
  0x13   : > { %652 = vmatpush3.bf16.msra.mxu0 %v723_v0  ;;  %691 = vmatpush3.bf16.msra.mxu1 %v723_v0  ;;  %v732_v5 = vld [vmem:[%s815_s22 + $0x20] sm:$0xff]   ;;  %v729_v8 = vld [vmem:[%s807_s19 + $0x30] sm:$0xff]   ;;  %v730_v9 = vld [vmem:[%s807_s19 + $0x38] sm:$0xff]  }
  0x14   : > { %653 = vmatprep.subr.bf16.mxu0 %v724_v1  ;;  %684 = vmatprep.subr.bf16.mxu1 %v724_v1  ;;  %v727_v6 = vld [vmem:[%s807_s19 + $0x20] sm:$0xff]   ;;  %v733_v10 = vld [vmem:[%s815_s22 + $0x8] sm:$0xff]   ;;  %v735_v12 = vld [vmem:[%s815_s22 + $0x10] sm:$0xff]  }
  0x15   : > { %667 = vmatprep.mubr.bf16.mxu0 %v731_v4  ;;  %675 = vmatprep.mubr.bf16.mxu1 %v732_v5  ;;  %v734_v11 = vld [vmem:[%s815_s22 + $0x28] sm:$0xff]   ;;  %v736_v13 = vld [vmem:[%s815_s22 + $0x30] sm:$0xff]   ;;  %v737_v14 = vld [vmem:[%s815_s22 + $0x18] sm:$0xff]  }
  0x16   : > { %v738_v15 = vld [vmem:[%s815_s22 + $0x38] sm:$0xff]  }
  0x17   : > { %654 = vmatpush3.bf16.msra.mxu0 %v724_v1  ;;  %692 = vmatpush3.bf16.msra.mxu1 %v724_v1 }
  0x18   : > { %655 = vmatprep.subr.bf16.mxu0 %v725_v2  ;;  %685 = vmatprep.subr.bf16.mxu1 %v725_v2 }
  0x1b   : > { %656 = vmatpush3.bf16.msra.mxu0 %v725_v2  ;;  %693 = vmatpush3.bf16.msra.mxu1 %v725_v2 }
  0x1c   : > { %657 = vmatprep.subr.bf16.mxu0 %v726_v3  ;;  %686 = vmatprep.subr.bf16.mxu1 %v726_v3 }
  0x1f   : > { %658 = vmatpush3.bf16.msra.mxu0 %v726_v3  ;;  %694 = vmatpush3.bf16.msra.mxu1 %v726_v3 }
  0x20   : > { %659 = vmatprep.subr.bf16.mxu0 %v727_v6  ;;  %687 = vmatprep.subr.bf16.mxu1 %v727_v6 }
  0x23   : > { %660 = vmatpush3.bf16.msra.mxu0 %v727_v6  ;;  %695 = vmatpush3.bf16.msra.mxu1 %v727_v6 }
  0x24   : > { %661 = vmatprep.subr.bf16.mxu0 %v728_v7  ;;  %688 = vmatprep.subr.bf16.mxu1 %v728_v7 }
  0x27   : > { %662 = vmatpush3.bf16.msra.mxu0 %v728_v7  ;;  %696 = vmatpush3.bf16.msra.mxu1 %v728_v7 }
  0x28   : > { %663 = vmatprep.subr.bf16.mxu0 %v729_v8  ;;  %689 = vmatprep.subr.bf16.mxu1 %v729_v8 }
  0x2b   : > { %664 = vmatpush3.bf16.msra.mxu0 %v729_v8  ;;  %697 = vmatpush3.bf16.msra.mxu1 %v729_v8 }
  0x2c   : > { %665 = vmatprep.subr.bf16.mxu0 %v730_v9  ;;  %690 = vmatprep.subr.bf16.mxu1 %v730_v9 }
  0x2f   : > { %666 = vmatpush3.bf16.msra.mxu0 %v730_v9  ;;  %698 = vmatpush3.bf16.msra.mxu1 %v730_v9 }
  0x32   : > { %668 = vmatmul.mubr.bf16.vlgmr.msra.gmra.mrb[0].mxu0 %v733_v10  ;;  %676 = vmatmul.mubr.bf16.vlgmr.msra.gmra.mrb[0].mxu1 %v734_v11 }
  0x33   : > { %671 = vmatprep.mubr.bf16.mxu0 %v735_v12  ;;  %679 = vmatprep.mubr.bf16.mxu1 %v736_v13 }
  0x3a   : > { %672 = vmatmul.mubr.bf16.gmra.mrb[4].mxu0 %v737_v14  ;;  %680 = vmatmul.mubr.bf16.gmra.mrb[4].mxu1 %v738_v15 }
 0x105   : > { %v669_v17 = vpop.f32.mrb[0].mxu0  ;;  %v677_v18 = vpop.f32.mrb[0].mxu1 }
 0x106   : > { %v423_v19 = vadd.f32 %v669_v17, %v613_v16  ;;  %v455_v20 = vadd.f32 %v677_v18, %v613_v16  ;;  %v414_v21 = vpop.f32.mrb[1].mxu0  ;;  %v446_v22 = vpop.f32.mrb[1].mxu1 }
 0x107   : > { %v415_v23 = vadd.f32 %v613_v16, %v414_v21  ;;  %v447_v24 = vadd.f32 %v613_v16, %v446_v22  ;;  %v670_v25 = vpop.f32.mrb[2].mxu0  ;;  %v678_v26 = vpop.f32.mrb[2].mxu1 }
 0x108   : > { %480 = vst.msk [vmem:[%s838_s29 + $0x10] sm:$0xff] %vm477_vm0, %v423_v19  ;;  %488 = vst.msk [vmem:[%s838_s29 + $0x50] sm:$0xff] %vm477_vm0, %v455_v20  ;;  %v426_v27 = vadd.f32 %v670_v25, %v613_v16  ;;  %v458_v28 = vadd.f32 %v678_v26, %v613_v16  ;;  %v417_v29 = vpop.f32.mrb[3].mxu0  ;;  %v449_v30 = vpop.f32.mrb[3].mxu1 }
 0x109   : > { %478 = vst.msk [vmem:[%s838_s29] sm:$0xff] %vm477_vm0, %v415_v23  ;;  %486 = vst.msk [vmem:[%s838_s29 + $0x40] sm:$0xff] %vm477_vm0, %v447_v24  ;;  %v418_v31 = vadd.f32 %v613_v16, %v417_v29  ;;  %v450_v32 = vadd.f32 %v613_v16, %v449_v30 }
 0x10a   : > { %481 = vst.msk [vmem:[%s838_s29 + $0x18] sm:$0xff] %vm477_vm0, %v426_v27  ;;  %489 = vst.msk [vmem:[%s838_s29 + $0x58] sm:$0xff] %vm477_vm0, %v458_v28 }
 0x10b   : > { %479 = vst.msk [vmem:[%s838_s29 + $0x8] sm:$0xff] %vm477_vm0, %v418_v31  ;;  %487 = vst.msk [vmem:[%s838_s29 + $0x48] sm:$0xff] %vm477_vm0, %v450_v32 }
 0x10d   : > { %v673_v33 = vpop.f32.mrb[4].mxu0  ;;  %v681_v34 = vpop.f32.mrb[4].mxu1 }
 0x10e   : > { %v439_v35 = vadd.f32 %v673_v33, %v613_v16  ;;  %v471_v36 = vadd.f32 %v681_v34, %v613_v16  ;;  %v430_v37 = vpop.f32.mrb[5].mxu0  ;;  %v462_v38 = vpop.f32.mrb[5].mxu1 }
 0x10f   : > { %v431_v39 = vadd.f32 %v613_v16, %v430_v37  ;;  %v463_v40 = vadd.f32 %v613_v16, %v462_v38  ;;  %v674_v41 = vpop.f32.mrb[6].mxu0  ;;  %v682_v42 = vpop.f32.mrb[6].mxu1 }
 0x110   : > { %484 = vst.msk [vmem:[%s838_s29 + $0x30] sm:$0xff] %vm477_vm0, %v439_v35  ;;  %492 = vst.msk [vmem:[%s838_s29 + $0x70] sm:$0xff] %vm477_vm0, %v471_v36  ;;  %v442_v43 = vadd.f32 %v674_v41, %v613_v16  ;;  %v474_v44 = vadd.f32 %v682_v42, %v613_v16  ;;  %v433_v45 = vpop.f32.mrb[7].mxu0  ;;  %v465_v46 = vpop.f32.mrb[7].mxu1 }
 0x111   : > { %482 = vst.msk [vmem:[%s838_s29 + $0x20] sm:$0xff] %vm477_vm0, %v431_v39  ;;  %490 = vst.msk [vmem:[%s838_s29 + $0x60] sm:$0xff] %vm477_vm0, %v463_v40  ;;  %v434_v47 = vadd.f32 %v613_v16, %v433_v45  ;;  %v466_v48 = vadd.f32 %v613_v16, %v465_v46 }
 0x112   : > { %485 = vst.msk [vmem:[%s838_s29 + $0x38] sm:$0xff] %vm477_vm0, %v442_v43  ;;  %493 = vst.msk [vmem:[%s838_s29 + $0x78] sm:$0xff] %vm477_vm0, %v474_v44 }
 0x113   : > { %483 = vst.msk [vmem:[%s838_s29 + $0x28] sm:$0xff] %vm477_vm0, %v434_v47  ;;  %491 = vst.msk [vmem:[%s838_s29 + $0x68] sm:$0xff] %vm477_vm0, %v466_v48 }
 0x114 PF: > { %s13_s14 = sadd.s32 1, %s761_s14   ;;  %s885_s12 = smov %s757_s13 }
 0x115   : > { %p10_p5 = scmp.ge.s32.totalorder %s13_s14, 6   ;;  %s886_s13 = smov %s888_s15 }
 0x117   :  { %12 = sbr.rel (!%p10_p5) target bundleno = 2 (0x2), region = 68 }

</bundles_post_ra>
